<compile_context>
chip_gen: v6e
topology: v6e:2x2x1
jax: 0.10.0
libtpu: 0.0.40
codegen_flags: <defaults>
</compile_context>

<pallas_src>
import functools
import math

import jax
import jax.numpy as jnp
from jax.experimental import pallas as pl
from jax.experimental.pallas import tpu as pltpu


# ----------------------------------------------------------------------------
# Kernel
# ----------------------------------------------------------------------------
def _layernorm(x, gamma, beta, eps=1e-5):
    # PyTorch LayerNorm: biased variance over the last dim, f32 math.
    mean = jnp.mean(x, axis=-1, keepdims=True)
    var = jnp.mean((x - mean) ** 2, axis=-1, keepdims=True)
    return (x - mean) * jax.lax.rsqrt(var + eps) * gamma + beta


def fused_encoder_kernel(x_ref,
                         wq_ref, bq_ref, wk_ref, bk_ref, wv_ref, bv_ref,
                         wo_ref, bo_ref, g1_ref, be1_ref,
                         w1_ref, b1_ref, w2_ref, b2_ref, g2_ref, be2_ref,
                         wmu_ref, bmu_ref, wlv_ref, blv_ref,
                         mu_ref, lv_ref,
                         h_sc,
                         *, n_heads, mem_pool, ffn_chunks):
    """Whole nn.TransformerEncoder stack + pooling + mu/logvar heads.

    Grid = (batch_blocks, num_layers); activation carried in VMEM scratch."""
    layer = pl.program_id(1)
    n_layers = pl.num_programs(1)
    bb, t, d = x_ref.shape
    rows = bb * t
    hd = d // n_heads

    # Load the (bf16) embeddings for this batch block once; afterwards the
    # f32 residual stream lives in VMEM scratch for the whole layer stack.
    @pl.when(layer == 0)
    def _():
        h_sc[...] = x_ref[...].reshape(rows, d).astype(jnp.float32)

    x = h_sc[...]                               # (rows, D) f32 residual stream
    xb = x.astype(jnp.bfloat16)                 # MXU operand (f32 accumulate)

    # ---- multi-head self-attention ------------------------------------------
    # Full-width projections (1/sqrt(hd) folded into wq/bq at pack time).
    q = (jnp.dot(xb, wq_ref[0], preferred_element_type=jnp.float32)
         + bq_ref[0]).astype(jnp.bfloat16)
    k = (jnp.dot(xb, wk_ref[0], preferred_element_type=jnp.float32)
         + bk_ref[0]).astype(jnp.bfloat16)
    v = (jnp.dot(xb, wv_ref[0], preferred_element_type=jnp.float32)
         + bv_ref[0]).astype(jnp.bfloat16)

    # Per-head score/softmax/PV core only (tiny TxT work); head outputs are
    # concatenated so the output projection is one full-contraction dot.
    heads = []
    for h in range(n_heads):                    # static unroll, small H
        lo, hi = h * hd, (h + 1) * hd
        qh = q[:, lo:hi].reshape(bb, t, hd)
        kh = k[:, lo:hi].reshape(bb, t, hd)
        vh = v[:, lo:hi].reshape(bb, t, hd)

        s = jnp.einsum('bqd,bkd->bqk', qh, kh,
                       preferred_element_type=jnp.float32)
        s = s - jnp.max(s, axis=-1, keepdims=True)
        p = jnp.exp(s)
        p = p * pl.reciprocal(jnp.sum(p, axis=-1, keepdims=True), approx=True)

        oh = jnp.einsum('bqk,bkd->bqd', p.astype(jnp.bfloat16), vh,
                        preferred_element_type=jnp.float32)
        heads.append(oh.reshape(rows, hd))
    o_cat = heads[0] if n_heads == 1 else jnp.concatenate(heads, axis=-1)

    attn = jnp.dot(o_cat.astype(jnp.bfloat16), wo_ref[0],
                   preferred_element_type=jnp.float32) + bo_ref[0]

    # ---- residual + norm1, ReLU FFN (optionally F-chunked), residual + norm2
    x1 = _layernorm(x + attn, g1_ref[0], be1_ref[0])
    x1b = x1.astype(jnp.bfloat16)

    w1 = w1_ref[0]                              # (D, F) bf16, resident in VMEM
    w2 = w2_ref[0]                              # (F, D) bf16
    b1 = b1_ref[0]                              # (1, F) f32
    f_total = w1.shape[-1]
    fc = f_total // ffn_chunks
    ff = jnp.zeros((rows, d), jnp.float32)
    for c in range(ffn_chunks):                 # static; bounds (rows, fc) temp
        lo, hi = c * fc, (c + 1) * fc
        hc = jnp.dot(x1b, w1[:, lo:hi],
                     preferred_element_type=jnp.float32) + b1[:, lo:hi]
        hc = jnp.maximum(hc, 0.0)
        ff = ff + jnp.dot(hc.astype(jnp.bfloat16), w2[lo:hi, :],
                          preferred_element_type=jnp.float32)
    ff = ff + b2_ref[0]

    out = _layernorm(x1 + ff, g2_ref[0], be2_ref[0])
    h_sc[...] = out

    # ---- fused pooling + mu / logvar heads on the last layer -----------------
    @pl.when(layer == n_layers - 1)
    def _():
        h3 = out.reshape(bb, t, d)
        if mem_pool == 'cls':
            mem = h3[:, 0, :]                   # == h[0] in PyTorch (T,B,D) layout
        else:
            mem = jnp.mean(h3, axis=1)          # == h.mean(dim=0)
        memb = mem.astype(jnp.bfloat16)
        mu_ref[0] = (jnp.dot(memb, wmu_ref[...],
                             preferred_element_type=jnp.float32) + bmu_ref[...])
        lv_ref[0] = (jnp.dot(memb, wlv_ref[...],
                             preferred_element_type=jnp.float32) + blv_ref[...])


# ----------------------------------------------------------------------------
# Wrapper helpers (all compile-time Python on static shapes)
# ----------------------------------------------------------------------------
def _pick_ffn_chunks(rows, d_ff, limit_bytes=8 * 1024 * 1024):
    """Chunk the FFN over F so the (rows, F/c) f32 ReLU temp stays bounded."""
    c = 1
    while rows * (d_ff // c) * 4 > limit_bytes and d_ff % (2 * c) == 0:
        c *= 2
    return c


def _layer_weight_bytes(pk):
    keys = ['wq', 'bq', 'wk', 'bk', 'wv', 'bv', 'wo', 'bo', 'g1', 'be1',
            'w1', 'b1', 'w2', 'b2', 'g2', 'be2']
    total = 0
    for k in keys:
        a = pk[k]
        total += (a.size // a.shape[0]) * a.dtype.itemsize
    return int(total)


def _auto_batch_block(B, T, D, F, latent, layer_bytes, vmem_limit):
    """Largest divisor of B whose VMEM footprint estimate fits the budget."""
    budget = int(vmem_limit * 0.55)
    best = 1
    for bb in range(1, B + 1):
        if B % bb:
            continue
        rows = bb * T
        fc = F // _pick_ffn_chunks(rows, F)
        resident = (2 * layer_bytes            # double-buffered layer weights
                    + 2 * rows * D * 2         # x block (bf16), double-buffered
                    + rows * D * 4             # h_sc residual stream
                    + 4 * bb * latent * 4)     # mu / logvar output blocks
        transient = (6 * rows * D * 4          # q/k/v/attn/x1/out f32 temps
                     + rows * fc * 4           # FFN ReLU intermediate
                     + 3 * bb * T * T * 4)     # per-head score/prob temps
        if resident + transient <= budget:
            best = bb
    return best


# ----------------------------------------------------------------------------
# Wrapper
# ----------------------------------------------------------------------------
def transformer_encoder_forward(token_ids, pk, *, n_heads, mem_pool='mean',
                                batch_block=None):
    B, T = token_ids.shape
    D = pk['emb'].shape[1]
    latent = pk['wmu'].shape[1]
    L = pk['wq'].shape[0]
    F = pk['w1'].shape[-1]
    hd = D // n_heads

    # Generation-specific VMEM budget (64 MiB/TC on v7x, 128 MiB on v5e/v6e).
    try:
        vmem_cap = int(pltpu.get_tpu_info().vmem_capacity_bytes)
    except Exception:
        vmem_cap = 64 * 1024 * 1024
    vmem_limit = int(min(vmem_cap * 0.8, 100 * 1024 * 1024))

    if batch_block is None:
        batch_block = _auto_batch_block(B, T, D, F, latent,
                                        _layer_weight_bytes(pk), vmem_limit)
    assert B % batch_block == 0
    nb = B // batch_block
    ffn_chunks = _pick_ffn_chunks(batch_block * T, F)

    # glue (plain JAX): embedding gather + positional encoding add.
    # Fed to the pipeline as bf16 (only consumed at layer 0); residual stream
    # stays f32 inside the kernel.  PyTorch transposes to (T,B,D) here; the
    # math is identical in (B,T,D).
    x = (jnp.take(pk['emb'], token_ids, axis=0)
         + pk['pe'][:T][None, :, :]).astype(jnp.bfloat16)

    def lspec(*tail):        # layer-stacked operand: block (1, *tail), index by l
        nz = (0,) * len(tail)
        return pl.BlockSpec((1,) + tuple(tail), lambda b, l, _nz=nz: (l,) + _nz)

    def cspec(*shape):       # constant operand: full block
        nz = (0,) * len(shape)
        return pl.BlockSpec(tuple(shape), lambda b, l, _nz=nz: _nz)

    in_specs = [
        pl.BlockSpec((batch_block, T, D), lambda b, l: (b, 0, 0)),   # x
        lspec(D, D), lspec(1, D),                                    # wq, bq
        lspec(D, D), lspec(1, D),                                    # wk, bk
        lspec(D, D), lspec(1, D),                                    # wv, bv
        lspec(D, D), lspec(1, D),                                    # wo, bo
        lspec(1, D), lspec(1, D),                                    # g1, be1
        lspec(D, F), lspec(1, F),                                    # w1, b1
        lspec(F, D), lspec(1, D),                                    # w2, b2
        lspec(1, D), lspec(1, D),                                    # g2, be2
        cspec(D, latent), cspec(1, latent),                          # wmu, bmu
        cspec(D, latent), cspec(1, latent),                          # wlv, blv
    ]
    out_spec = pl.BlockSpec((1, batch_block, latent), lambda b, l: (b, 0, 0))
    out_shape = (jax.ShapeDtypeStruct((nb, batch_block, latent), jnp.float32),
                 jax.ShapeDtypeStruct((nb, batch_block, latent), jnp.float32))

    # Advisory cost estimate for XLA scheduling.
    rows = B * T
    flops = int(L * (8 * rows * D * D + 4 * B * n_heads * T * T * hd
                     + 4 * rows * D * F) + 4 * B * D * latent)
    transcendentals = int(L * B * n_heads * T * T + 2 * L * rows)
    wkeys = ['wq', 'bq', 'wk', 'bk', 'wv', 'bv', 'wo', 'bo', 'g1', 'be1',
             'w1', 'b1', 'w2', 'b2', 'g2', 'be2', 'wmu', 'bmu', 'wlv', 'blv']
    bytes_accessed = int(rows * D * 2
                         + nb * sum(int(pk[k].size) * pk[k].dtype.itemsize
                                    for k in wkeys)
                         + 2 * B * latent * 4)

    mu3, lv3 = pl.pallas_call(
        functools.partial(fused_encoder_kernel, n_heads=n_heads,
                          mem_pool=mem_pool, ffn_chunks=ffn_chunks),
        out_shape=out_shape,
        grid_spec=pltpu.PrefetchScalarGridSpec(
            num_scalar_prefetch=0,
            grid=(nb, L),                               # (batch blocks, layers)
            in_specs=in_specs,
            out_specs=(out_spec, out_spec),
            scratch_shapes=[pltpu.VMEM((batch_block * T, D), jnp.float32)]),
        compiler_params=pltpu.CompilerParams(
            dimension_semantics=("parallel", "arbitrary"),
            vmem_limit_bytes=vmem_limit),
        cost_estimate=pl.CostEstimate(flops=flops,
                                      transcendentals=transcendentals,
                                      bytes_accessed=bytes_accessed),
    )(x, pk['wq'], pk['bq'], pk['wk'], pk['bk'], pk['wv'], pk['bv'],
      pk['wo'], pk['bo'], pk['g1'], pk['be1'],
      pk['w1'], pk['b1'], pk['w2'], pk['b2'], pk['g2'], pk['be2'],
      pk['wmu'], pk['bmu'], pk['wlv'], pk['blv'])
    return mu3.reshape(B, latent), lv3.reshape(B, latent)


# ----------------------------------------------------------------------------
# Parameter init (shapes follow the module's __init__) + kernel-side packing
# ----------------------------------------------------------------------------
def init_params(key, *, voc_size, d_model, num_layers, latent_dim, max_len=512):
    d_ff = 4 * d_model
    scale = 0.02
    keys = jax.random.split(key, 2 + num_layers)
    params = {}
    params['emb'] = scale * jax.random.normal(keys[0], (voc_size, d_model),
                                              jnp.float32)

    # PositionalEncoding buffer (exact PyTorch formula)
    pos = jnp.arange(max_len, dtype=jnp.float32)[:, None]
    two_i = jnp.arange(0, d_model, 2, dtype=jnp.float32)
    div = jnp.exp(two_i * -(math.log(10000.0) / d_model))
    pe = jnp.zeros((max_len, d_model), jnp.float32)
    pe = pe.at[:, 0::2].set(jnp.sin(pos * div))
    pe = pe.at[:, 1::2].set(jnp.cos(pos * div))
    params['pe'] = pe

    layers = []
    for l in range(num_layers):
        lk = jax.random.split(keys[1 + l], 6)
        layers.append(dict(
            # weights stored pre-transposed: y = x @ W + b
            wq=scale * jax.random.normal(lk[0], (d_model, d_model), jnp.float32),
            bq=jnp.zeros((1, d_model), jnp.float32),
            wk=scale * jax.random.normal(lk[1], (d_model, d_model), jnp.float32),
            bk=jnp.zeros((1, d_model), jnp.float32),
            wv=scale * jax.random.normal(lk[2], (d_model, d_model), jnp.float32),
            bv=jnp.zeros((1, d_model), jnp.float32),
            wo=scale * jax.random.normal(lk[3], (d_model, d_model), jnp.float32),
            bo=jnp.zeros((1, d_model), jnp.float32),
            g1=jnp.ones((1, d_model), jnp.float32),
            be1=jnp.zeros((1, d_model), jnp.float32),
            w1=scale * jax.random.normal(lk[4], (d_model, d_ff), jnp.float32),
            b1=jnp.zeros((1, d_ff), jnp.float32),
            w2=scale * jax.random.normal(lk[5], (d_ff, d_model), jnp.float32),
            b2=jnp.zeros((1, d_model), jnp.float32),
            g2=jnp.ones((1, d_model), jnp.float32),
            be2=jnp.zeros((1, d_model), jnp.float32),
        ))
    params['layers'] = layers

    hk = jax.random.split(keys[-1], 2)
    params['wmu'] = scale * jax.random.normal(hk[0], (d_model, latent_dim), jnp.float32)
    params['bmu'] = jnp.zeros((1, latent_dim), jnp.float32)
    params['wlv'] = scale * jax.random.normal(hk[1], (d_model, latent_dim), jnp.float32)
    params['blv'] = jnp.zeros((1, latent_dim), jnp.float32)
    return params


def pack_params(params, *, n_heads):
    """Stack per-layer weights along a leading L axis, fold the 1/sqrt(hd)
    attention scale into Wq/bq, and cast every MXU weight operand to bf16
    (one-time, outside the kernel).  Biases / norm params stay f32."""
    D = params['layers'][0]['wq'].shape[0]
    hd = D // n_heads
    attn_scale = 1.0 / math.sqrt(hd)

    def stack(key, fn=lambda a: a):
        return jnp.stack([fn(lp[key]) for lp in params['layers']])

    return dict(
        emb=params['emb'], pe=params['pe'],
        wq=(stack('wq') * attn_scale).astype(jnp.bfloat16),
        bq=stack('bq') * attn_scale,
        wk=stack('wk').astype(jnp.bfloat16), bk=stack('bk'),
        wv=stack('wv').astype(jnp.bfloat16), bv=stack('bv'),
        wo=stack('wo').astype(jnp.bfloat16), bo=stack('bo'),
        g1=stack('g1'), be1=stack('be1'),
        w1=stack('w1').astype(jnp.bfloat16), b1=stack('b1'),
        w2=stack('w2').astype(jnp.bfloat16), b2=stack('b2'),
        g2=stack('g2'), be2=stack('be2'),
        wmu=params['wmu'].astype(jnp.bfloat16), bmu=params['bmu'],
        wlv=params['wlv'].astype(jnp.bfloat16), blv=params['blv'],
    )


# ----------------------------------------------------------------------------
if __name__ == "__main__":
    B, T = 2, 8
    voc_size, d_model, n_heads, num_layers, latent_dim = 40, 32, 4, 2, 16
    mem_pool = 'mean'

    root = jax.random.PRNGKey(0)
    k_param, k_tok = jax.random.split(root)
    params = init_params(k_param, voc_size=voc_size, d_model=d_model,
                         num_layers=num_layers, latent_dim=latent_dim)
    packed = pack_params(params, n_heads=n_heads)
    token_ids = jax.random.randint(k_tok, (B, T), 0, voc_size, dtype=jnp.int32)

    fwd = jax.jit(functools.partial(transformer_encoder_forward,
                                    n_heads=n_heads, mem_pool=mem_pool))
    mu, logvar = fwd(token_ids, packed)
    jax.block_until_ready((mu, logvar))

    assert mu.shape == (B, latent_dim) and logvar.shape == (B, latent_dim)
    assert jnp.all(jnp.isfinite(mu)) and jnp.all(jnp.isfinite(logvar))
    print("KERNEL_OK")
</pallas_src>

<mosaic_0001>
module attributes {stable_mosaic.version = 11 : i64} {
  func.func @fused_encoder_kernel(%arg0: i32, %arg1: i32, %arg2: memref<2x8x32xbf16, #tpu.memory_space<vmem>>, %arg3: memref<1x32x32xbf16, #tpu.memory_space<vmem>>, %arg4: memref<1x1x32xf32, #tpu.memory_space<vmem>>, %arg5: memref<1x32x32xbf16, #tpu.memory_space<vmem>>, %arg6: memref<1x1x32xf32, #tpu.memory_space<vmem>>, %arg7: memref<1x32x32xbf16, #tpu.memory_space<vmem>>, %arg8: memref<1x1x32xf32, #tpu.memory_space<vmem>>, %arg9: memref<1x32x32xbf16, #tpu.memory_space<vmem>>, %arg10: memref<1x1x32xf32, #tpu.memory_space<vmem>>, %arg11: memref<1x1x32xf32, #tpu.memory_space<vmem>>, %arg12: memref<1x1x32xf32, #tpu.memory_space<vmem>>, %arg13: memref<1x32x128xbf16, #tpu.memory_space<vmem>>, %arg14: memref<1x1x128xf32, #tpu.memory_space<vmem>>, %arg15: memref<1x128x32xbf16, #tpu.memory_space<vmem>>, %arg16: memref<1x1x32xf32, #tpu.memory_space<vmem>>, %arg17: memref<1x1x32xf32, #tpu.memory_space<vmem>>, %arg18: memref<1x1x32xf32, #tpu.memory_space<vmem>>, %arg19: memref<32x16xbf16, #tpu.memory_space<vmem>>, %arg20: memref<1x16xf32, #tpu.memory_space<vmem>>, %arg21: memref<32x16xbf16, #tpu.memory_space<vmem>>, %arg22: memref<1x16xf32, #tpu.memory_space<vmem>>, %arg23: memref<1x2x16xf32, #tpu.memory_space<vmem>>, %arg24: memref<1x2x16xf32, #tpu.memory_space<vmem>>, %arg25: memref<16x32xf32, #tpu.memory_space<vmem>>) attributes {dimension_semantics = [#tpu.dimension_semantics<parallel>, #tpu.dimension_semantics<arbitrary>], iteration_bounds = array<i64: 1, 2>, scalar_prefetch = 0 : i64, scratch_operands = 1 : i64, tpu.core_type = #tpu.core_type<tc>, window_params = [{transform_indices = @transform_0, window_bounds = array<i64: 2, 8, 32>}, {transform_indices = @transform_1, window_bounds = array<i64: 1, 32, 32>}, {transform_indices = @transform_2, window_bounds = array<i64: 1, 1, 32>}, {transform_indices = @transform_3, window_bounds = array<i64: 1, 32, 32>}, {transform_indices = @transform_4, window_bounds = array<i64: 1, 1, 32>}, {transform_indices = @transform_5, window_bounds = array<i64: 1, 32, 32>}, {transform_indices = @transform_6, window_bounds = array<i64: 1, 1, 32>}, {transform_indices = @transform_7, window_bounds = array<i64: 1, 32, 32>}, {transform_indices = @transform_8, window_bounds = array<i64: 1, 1, 32>}, {transform_indices = @transform_9, window_bounds = array<i64: 1, 1, 32>}, {transform_indices = @transform_10, window_bounds = array<i64: 1, 1, 32>}, {transform_indices = @transform_11, window_bounds = array<i64: 1, 32, 128>}, {transform_indices = @transform_12, window_bounds = array<i64: 1, 1, 128>}, {transform_indices = @transform_13, window_bounds = array<i64: 1, 128, 32>}, {transform_indices = @transform_14, window_bounds = array<i64: 1, 1, 32>}, {transform_indices = @transform_15, window_bounds = array<i64: 1, 1, 32>}, {transform_indices = @transform_16, window_bounds = array<i64: 1, 1, 32>}, {pipeline_mode = #tpu.pipeline_mode<synchronous>, transform_indices = @transform_17, window_bounds = array<i64: 32, 16>}, {pipeline_mode = #tpu.pipeline_mode<synchronous>, transform_indices = @transform_18, window_bounds = array<i64: 1, 16>}, {pipeline_mode = #tpu.pipeline_mode<synchronous>, transform_indices = @transform_19, window_bounds = array<i64: 32, 16>}, {pipeline_mode = #tpu.pipeline_mode<synchronous>, transform_indices = @transform_20, window_bounds = array<i64: 1, 16>}, {transform_indices = @transform_21, window_bounds = array<i64: 1, 2, 16>}, {transform_indices = @transform_22, window_bounds = array<i64: 1, 2, 16>}]} {
    %c0_i32 = arith.constant 0 : i32
    %0 = arith.cmpi eq, %arg1, %c0_i32 : i32
    %1 = arith.extui %0 : i1 to i32
    %c0_i32_0 = arith.constant 0 : i32
    %2 = arith.cmpi ne, %1, %c0_i32_0 : i32
    scf.if %2 {
      %c0_86 = arith.constant 0 : index
      %c0_87 = arith.constant 0 : index
      %c0_88 = arith.constant 0 : index
      %196 = vector.load %arg2[%c0_86, %c0_87, %c0_88] : memref<2x8x32xbf16, #tpu.memory_space<vmem>>, vector<2x8x32xbf16>
      %197 = vector.shape_cast %196 : vector<2x8x32xbf16> to vector<16x32xbf16>
      %198 = arith.extf %197 : vector<16x32xbf16> to vector<16x32xf32>
      %c0_89 = arith.constant 0 : index
      %c0_90 = arith.constant 0 : index
      %199 = vector.load %arg25[%c0_89, %c0_90] : memref<16x32xf32, #tpu.memory_space<vmem>>, vector<16x32xf32>
      tpu.vector_store %arg25[%c0_89, %c0_90], %198 {strides = array<i32>} : memref<16x32xf32, #tpu.memory_space<vmem>>, vector<16x32xf32>,
    } else {
    }
    %c0 = arith.constant 0 : index
    %c0_1 = arith.constant 0 : index
    %3 = vector.load %arg25[%c0, %c0_1] : memref<16x32xf32, #tpu.memory_space<vmem>>, vector<16x32xf32>
    %4 = arith.truncf %3 : vector<16x32xf32> to vector<16x32xbf16>
    %c0_2 = arith.constant 0 : index
    %c0_3 = arith.constant 0 : index
    %c0_4 = arith.constant 0 : index
    %5 = vector.load %arg3[%c0_2, %c0_3, %c0_4] : memref<1x32x32xbf16, #tpu.memory_space<vmem>>, vector<1x32x32xbf16>
    %6 = vector.shape_cast %5 : vector<1x32x32xbf16> to vector<32x32xbf16>
    %cst = arith.constant dense<0.000000e+00> : vector<16x32xf32>
    %7 = tpu.matmul %4, %6, %cst {dimension_numbers = #tpu.dot_dimension_numbers<[1], [0], [0], [1], [0, 0, 1, 1], [], []>} : vector<16x32xbf16>, vector<32x32xbf16>, vector<16x32xf32> -> vector<16x32xf32>
    %c0_5 = arith.constant 0 : index
    %c0_6 = arith.constant 0 : index
    %c0_7 = arith.constant 0 : index
    %8 = vector.load %arg4[%c0_5, %c0_6, %c0_7] : memref<1x1x32xf32, #tpu.memory_space<vmem>>, vector<1x1x32xf32>
    %9 = vector.shape_cast %8 : vector<1x1x32xf32> to vector<1x32xf32>
    %10 = vector.broadcast %9 : vector<1x32xf32> to vector<16x32xf32>
    %11 = arith.addf %7, %10 : vector<16x32xf32>
    %12 = arith.truncf %11 : vector<16x32xf32> to vector<16x32xbf16>
    %c0_8 = arith.constant 0 : index
    %c0_9 = arith.constant 0 : index
    %c0_10 = arith.constant 0 : index
    %13 = vector.load %arg5[%c0_8, %c0_9, %c0_10] : memref<1x32x32xbf16, #tpu.memory_space<vmem>>, vector<1x32x32xbf16>
    %14 = vector.shape_cast %13 : vector<1x32x32xbf16> to vector<32x32xbf16>
    %cst_11 = arith.constant dense<0.000000e+00> : vector<16x32xf32>
    %15 = tpu.matmul %4, %14, %cst_11 {dimension_numbers = #tpu.dot_dimension_numbers<[1], [0], [0], [1], [0, 0, 1, 1], [], []>} : vector<16x32xbf16>, vector<32x32xbf16>, vector<16x32xf32> -> vector<16x32xf32>
    %c0_12 = arith.constant 0 : index
    %c0_13 = arith.constant 0 : index
    %c0_14 = arith.constant 0 : index
    %16 = vector.load %arg6[%c0_12, %c0_13, %c0_14] : memref<1x1x32xf32, #tpu.memory_space<vmem>>, vector<1x1x32xf32>
    %17 = vector.shape_cast %16 : vector<1x1x32xf32> to vector<1x32xf32>
    %18 = vector.broadcast %17 : vector<1x32xf32> to vector<16x32xf32>
    %19 = arith.addf %15, %18 : vector<16x32xf32>
    %20 = arith.truncf %19 : vector<16x32xf32> to vector<16x32xbf16>
    %c0_15 = arith.constant 0 : index
    %c0_16 = arith.constant 0 : index
    %c0_17 = arith.constant 0 : index
    %21 = vector.load %arg7[%c0_15, %c0_16, %c0_17] : memref<1x32x32xbf16, #tpu.memory_space<vmem>>, vector<1x32x32xbf16>
    %22 = vector.shape_cast %21 : vector<1x32x32xbf16> to vector<32x32xbf16>
    %cst_18 = arith.constant dense<0.000000e+00> : vector<16x32xf32>
    %23 = tpu.matmul %4, %22, %cst_18 {dimension_numbers = #tpu.dot_dimension_numbers<[1], [0], [0], [1], [0, 0, 1, 1], [], []>} : vector<16x32xbf16>, vector<32x32xbf16>, vector<16x32xf32> -> vector<16x32xf32>
    %c0_19 = arith.constant 0 : index
    %c0_20 = arith.constant 0 : index
    %c0_21 = arith.constant 0 : index
    %24 = vector.load %arg8[%c0_19, %c0_20, %c0_21] : memref<1x1x32xf32, #tpu.memory_space<vmem>>, vector<1x1x32xf32>
    %25 = vector.shape_cast %24 : vector<1x1x32xf32> to vector<1x32xf32>
    %26 = vector.broadcast %25 : vector<1x32xf32> to vector<16x32xf32>
    %27 = arith.addf %23, %26 : vector<16x32xf32>
    %28 = arith.truncf %27 : vector<16x32xf32> to vector<16x32xbf16>
    %29 = vector.extract_strided_slice %12 {offsets = [0, 0], sizes = [16, 8], strides = [1, 1]} : vector<16x32xbf16> to vector<16x8xbf16>
    %30 = vector.shape_cast %29 : vector<16x8xbf16> to vector<2x8x8xbf16>
    %31 = vector.extract_strided_slice %20 {offsets = [0, 0], sizes = [16, 8], strides = [1, 1]} : vector<16x32xbf16> to vector<16x8xbf16>
    %32 = vector.shape_cast %31 : vector<16x8xbf16> to vector<2x8x8xbf16>
    %33 = vector.extract_strided_slice %28 {offsets = [0, 0], sizes = [16, 8], strides = [1, 1]} : vector<16x32xbf16> to vector<16x8xbf16>
    %34 = vector.shape_cast %33 : vector<16x8xbf16> to vector<2x8x8xbf16>
    "tpu.trace_start"() <{level = 10 : i32, message = "bqd,bkd->bqk"}> : () -> ()
    %cst_22 = arith.constant dense<0.000000e+00> : vector<2x8x8xf32>
    %35 = tpu.matmul %30, %32, %cst_22 {dimension_numbers = #tpu.dot_dimension_numbers<[2], [2], [1], [1], [0, 0, 0, 1, 1, 1], [0], [0]>} : vector<2x8x8xbf16>, vector<2x8x8xbf16>, vector<2x8x8xf32> -> vector<2x8x8xf32>
    "tpu.trace_stop"() : () -> ()
    %cst_23 = arith.constant dense<0xFF800000> : vector<2x8xf32>
    %36 = vector.multi_reduction <maximumf>, %35, %cst_23 [2] : vector<2x8x8xf32> to vector<2x8xf32>
    %37 = vector.shape_cast %36 : vector<2x8xf32> to vector<2x8x1xf32>
    %38 = vector.broadcast %37 : vector<2x8x1xf32> to vector<2x8x8xf32>
    %39 = arith.subf %35, %38 : vector<2x8x8xf32>
    %40 = math.exp %39 : vector<2x8x8xf32>
    %cst_24 = arith.constant dense<0.000000e+00> : vector<2x8xf32>
    %41 = vector.multi_reduction <add>, %40, %cst_24 [2] : vector<2x8x8xf32> to vector<2x8xf32>
    %42 = vector.shape_cast %41 : vector<2x8xf32> to vector<2x8x1xf32>
    %43 = tpu.reciprocal %42 {approx = true} : vector<2x8x1xf32> -> vector<2x8x1xf32>
    %44 = vector.broadcast %43 : vector<2x8x1xf32> to vector<2x8x8xf32>
    %45 = arith.mulf %40, %44 : vector<2x8x8xf32>
    %46 = arith.truncf %45 : vector<2x8x8xf32> to vector<2x8x8xbf16>
    "tpu.trace_start"() <{level = 10 : i32, message = "bqk,bkd->bqd"}> : () -> ()
    %cst_25 = arith.constant dense<0.000000e+00> : vector<2x8x8xf32>
    %47 = tpu.matmul %46, %34, %cst_25 {dimension_numbers = #tpu.dot_dimension_numbers<[2], [1], [1], [2], [0, 0, 0, 1, 1, 2], [0], [0]>} : vector<2x8x8xbf16>, vector<2x8x8xbf16>, vector<2x8x8xf32> -> vector<2x8x8xf32>
    "tpu.trace_stop"() : () -> ()
    %48 = vector.shape_cast %47 : vector<2x8x8xf32> to vector<16x8xf32>
    %49 = vector.extract_strided_slice %12 {offsets = [0, 8], sizes = [16, 8], strides = [1, 1]} : vector<16x32xbf16> to vector<16x8xbf16>
    %50 = vector.shape_cast %49 : vector<16x8xbf16> to vector<2x8x8xbf16>
    %51 = vector.extract_strided_slice %20 {offsets = [0, 8], sizes = [16, 8], strides = [1, 1]} : vector<16x32xbf16> to vector<16x8xbf16>
    %52 = vector.shape_cast %51 : vector<16x8xbf16> to vector<2x8x8xbf16>
    %53 = vector.extract_strided_slice %28 {offsets = [0, 8], sizes = [16, 8], strides = [1, 1]} : vector<16x32xbf16> to vector<16x8xbf16>
    %54 = vector.shape_cast %53 : vector<16x8xbf16> to vector<2x8x8xbf16>
    "tpu.trace_start"() <{level = 10 : i32, message = "bqd,bkd->bqk"}> : () -> ()
    %cst_26 = arith.constant dense<0.000000e+00> : vector<2x8x8xf32>
    %55 = tpu.matmul %50, %52, %cst_26 {dimension_numbers = #tpu.dot_dimension_numbers<[2], [2], [1], [1], [0, 0, 0, 1, 1, 1], [0], [0]>} : vector<2x8x8xbf16>, vector<2x8x8xbf16>, vector<2x8x8xf32> -> vector<2x8x8xf32>
    "tpu.trace_stop"() : () -> ()
    %cst_27 = arith.constant dense<0xFF800000> : vector<2x8xf32>
    %56 = vector.multi_reduction <maximumf>, %55, %cst_27 [2] : vector<2x8x8xf32> to vector<2x8xf32>
    %57 = vector.shape_cast %56 : vector<2x8xf32> to vector<2x8x1xf32>
    %58 = vector.broadcast %57 : vector<2x8x1xf32> to vector<2x8x8xf32>
    %59 = arith.subf %55, %58 : vector<2x8x8xf32>
    %60 = math.exp %59 : vector<2x8x8xf32>
    %cst_28 = arith.constant dense<0.000000e+00> : vector<2x8xf32>
    %61 = vector.multi_reduction <add>, %60, %cst_28 [2] : vector<2x8x8xf32> to vector<2x8xf32>
    %62 = vector.shape_cast %61 : vector<2x8xf32> to vector<2x8x1xf32>
    %63 = tpu.reciprocal %62 {approx = true} : vector<2x8x1xf32> -> vector<2x8x1xf32>
    %64 = vector.broadcast %63 : vector<2x8x1xf32> to vector<2x8x8xf32>
    %65 = arith.mulf %60, %64 : vector<2x8x8xf32>
    %66 = arith.truncf %65 : vector<2x8x8xf32> to vector<2x8x8xbf16>
    "tpu.trace_start"() <{level = 10 : i32, message = "bqk,bkd->bqd"}> : () -> ()
    %cst_29 = arith.constant dense<0.000000e+00> : vector<2x8x8xf32>
    %67 = tpu.matmul %66, %54, %cst_29 {dimension_numbers = #tpu.dot_dimension_numbers<[2], [1], [1], [2], [0, 0, 0, 1, 1, 2], [0], [0]>} : vector<2x8x8xbf16>, vector<2x8x8xbf16>, vector<2x8x8xf32> -> vector<2x8x8xf32>
    "tpu.trace_stop"() : () -> ()
    %68 = vector.shape_cast %67 : vector<2x8x8xf32> to vector<16x8xf32>
    %69 = vector.extract_strided_slice %12 {offsets = [0, 16], sizes = [16, 8], strides = [1, 1]} : vector<16x32xbf16> to vector<16x8xbf16>
    %70 = vector.shape_cast %69 : vector<16x8xbf16> to vector<2x8x8xbf16>
    %71 = vector.extract_strided_slice %20 {offsets = [0, 16], sizes = [16, 8], strides = [1, 1]} : vector<16x32xbf16> to vector<16x8xbf16>
    %72 = vector.shape_cast %71 : vector<16x8xbf16> to vector<2x8x8xbf16>
    %73 = vector.extract_strided_slice %28 {offsets = [0, 16], sizes = [16, 8], strides = [1, 1]} : vector<16x32xbf16> to vector<16x8xbf16>
    %74 = vector.shape_cast %73 : vector<16x8xbf16> to vector<2x8x8xbf16>
    "tpu.trace_start"() <{level = 10 : i32, message = "bqd,bkd->bqk"}> : () -> ()
    %cst_30 = arith.constant dense<0.000000e+00> : vector<2x8x8xf32>
    %75 = tpu.matmul %70, %72, %cst_30 {dimension_numbers = #tpu.dot_dimension_numbers<[2], [2], [1], [1], [0, 0, 0, 1, 1, 1], [0], [0]>} : vector<2x8x8xbf16>, vector<2x8x8xbf16>, vector<2x8x8xf32> -> vector<2x8x8xf32>
    "tpu.trace_stop"() : () -> ()
    %cst_31 = arith.constant dense<0xFF800000> : vector<2x8xf32>
    %76 = vector.multi_reduction <maximumf>, %75, %cst_31 [2] : vector<2x8x8xf32> to vector<2x8xf32>
    %77 = vector.shape_cast %76 : vector<2x8xf32> to vector<2x8x1xf32>
    %78 = vector.broadcast %77 : vector<2x8x1xf32> to vector<2x8x8xf32>
    %79 = arith.subf %75, %78 : vector<2x8x8xf32>
    %80 = math.exp %79 : vector<2x8x8xf32>
    %cst_32 = arith.constant dense<0.000000e+00> : vector<2x8xf32>
    %81 = vector.multi_reduction <add>, %80, %cst_32 [2] : vector<2x8x8xf32> to vector<2x8xf32>
    %82 = vector.shape_cast %81 : vector<2x8xf32> to vector<2x8x1xf32>
    %83 = tpu.reciprocal %82 {approx = true} : vector<2x8x1xf32> -> vector<2x8x1xf32>
    %84 = vector.broadcast %83 : vector<2x8x1xf32> to vector<2x8x8xf32>
    %85 = arith.mulf %80, %84 : vector<2x8x8xf32>
    %86 = arith.truncf %85 : vector<2x8x8xf32> to vector<2x8x8xbf16>
    "tpu.trace_start"() <{level = 10 : i32, message = "bqk,bkd->bqd"}> : () -> ()
    %cst_33 = arith.constant dense<0.000000e+00> : vector<2x8x8xf32>
    %87 = tpu.matmul %86, %74, %cst_33 {dimension_numbers = #tpu.dot_dimension_numbers<[2], [1], [1], [2], [0, 0, 0, 1, 1, 2], [0], [0]>} : vector<2x8x8xbf16>, vector<2x8x8xbf16>, vector<2x8x8xf32> -> vector<2x8x8xf32>
    "tpu.trace_stop"() : () -> ()
    %88 = vector.shape_cast %87 : vector<2x8x8xf32> to vector<16x8xf32>
    %89 = vector.extract_strided_slice %12 {offsets = [0, 24], sizes = [16, 8], strides = [1, 1]} : vector<16x32xbf16> to vector<16x8xbf16>
    %90 = vector.shape_cast %89 : vector<16x8xbf16> to vector<2x8x8xbf16>
    %91 = vector.extract_strided_slice %20 {offsets = [0, 24], sizes = [16, 8], strides = [1, 1]} : vector<16x32xbf16> to vector<16x8xbf16>
    %92 = vector.shape_cast %91 : vector<16x8xbf16> to vector<2x8x8xbf16>
    %93 = vector.extract_strided_slice %28 {offsets = [0, 24], sizes = [16, 8], strides = [1, 1]} : vector<16x32xbf16> to vector<16x8xbf16>
    %94 = vector.shape_cast %93 : vector<16x8xbf16> to vector<2x8x8xbf16>
    "tpu.trace_start"() <{level = 10 : i32, message = "bqd,bkd->bqk"}> : () -> ()
    %cst_34 = arith.constant dense<0.000000e+00> : vector<2x8x8xf32>
    %95 = tpu.matmul %90, %92, %cst_34 {dimension_numbers = #tpu.dot_dimension_numbers<[2], [2], [1], [1], [0, 0, 0, 1, 1, 1], [0], [0]>} : vector<2x8x8xbf16>, vector<2x8x8xbf16>, vector<2x8x8xf32> -> vector<2x8x8xf32>
    "tpu.trace_stop"() : () -> ()
    %cst_35 = arith.constant dense<0xFF800000> : vector<2x8xf32>
    %96 = vector.multi_reduction <maximumf>, %95, %cst_35 [2] : vector<2x8x8xf32> to vector<2x8xf32>
    %97 = vector.shape_cast %96 : vector<2x8xf32> to vector<2x8x1xf32>
    %98 = vector.broadcast %97 : vector<2x8x1xf32> to vector<2x8x8xf32>
    %99 = arith.subf %95, %98 : vector<2x8x8xf32>
    %100 = math.exp %99 : vector<2x8x8xf32>
    %cst_36 = arith.constant dense<0.000000e+00> : vector<2x8xf32>
    %101 = vector.multi_reduction <add>, %100, %cst_36 [2] : vector<2x8x8xf32> to vector<2x8xf32>
    %102 = vector.shape_cast %101 : vector<2x8xf32> to vector<2x8x1xf32>
    %103 = tpu.reciprocal %102 {approx = true} : vector<2x8x1xf32> -> vector<2x8x1xf32>
    %104 = vector.broadcast %103 : vector<2x8x1xf32> to vector<2x8x8xf32>
    %105 = arith.mulf %100, %104 : vector<2x8x8xf32>
    %106 = arith.truncf %105 : vector<2x8x8xf32> to vector<2x8x8xbf16>
    "tpu.trace_start"() <{level = 10 : i32, message = "bqk,bkd->bqd"}> : () -> ()
    %cst_37 = arith.constant dense<0.000000e+00> : vector<2x8x8xf32>
    %107 = tpu.matmul %106, %94, %cst_37 {dimension_numbers = #tpu.dot_dimension_numbers<[2], [1], [1], [2], [0, 0, 0, 1, 1, 2], [0], [0]>} : vector<2x8x8xbf16>, vector<2x8x8xbf16>, vector<2x8x8xf32> -> vector<2x8x8xf32>
    "tpu.trace_stop"() : () -> ()
    %108 = vector.shape_cast %107 : vector<2x8x8xf32> to vector<16x8xf32>
    %109 = tpu.concatenate %48, %68, %88, %108 in 1 : vector<16x8xf32>, vector<16x8xf32>, vector<16x8xf32>, vector<16x8xf32> -> vector<16x32xf32>
    %110 = arith.truncf %109 : vector<16x32xf32> to vector<16x32xbf16>
    %c0_38 = arith.constant 0 : index
    %c0_39 = arith.constant 0 : index
    %c0_40 = arith.constant 0 : index
    %111 = vector.load %arg9[%c0_38, %c0_39, %c0_40] : memref<1x32x32xbf16, #tpu.memory_space<vmem>>, vector<1x32x32xbf16>
    %112 = vector.shape_cast %111 : vector<1x32x32xbf16> to vector<32x32xbf16>
    %cst_41 = arith.constant dense<0.000000e+00> : vector<16x32xf32>
    %113 = tpu.matmul %110, %112, %cst_41 {dimension_numbers = #tpu.dot_dimension_numbers<[1], [0], [0], [1], [0, 0, 1, 1], [], []>} : vector<16x32xbf16>, vector<32x32xbf16>, vector<16x32xf32> -> vector<16x32xf32>
    %c0_42 = arith.constant 0 : index
    %c0_43 = arith.constant 0 : index
    %c0_44 = arith.constant 0 : index
    %114 = vector.load %arg10[%c0_42, %c0_43, %c0_44] : memref<1x1x32xf32, #tpu.memory_space<vmem>>, vector<1x1x32xf32>
    %115 = vector.shape_cast %114 : vector<1x1x32xf32> to vector<1x32xf32>
    %116 = vector.broadcast %115 : vector<1x32xf32> to vector<16x32xf32>
    %117 = arith.addf %113, %116 : vector<16x32xf32>
    %118 = arith.addf %3, %117 : vector<16x32xf32>
    %c0_45 = arith.constant 0 : index
    %c0_46 = arith.constant 0 : index
    %c0_47 = arith.constant 0 : index
    %119 = vector.load %arg11[%c0_45, %c0_46, %c0_47] : memref<1x1x32xf32, #tpu.memory_space<vmem>>, vector<1x1x32xf32>
    %120 = vector.shape_cast %119 : vector<1x1x32xf32> to vector<1x32xf32>
    %c0_48 = arith.constant 0 : index
    %c0_49 = arith.constant 0 : index
    %c0_50 = arith.constant 0 : index
    %121 = vector.load %arg12[%c0_48, %c0_49, %c0_50] : memref<1x1x32xf32, #tpu.memory_space<vmem>>, vector<1x1x32xf32>
    %122 = vector.shape_cast %121 : vector<1x1x32xf32> to vector<1x32xf32>
    %cst_51 = arith.constant dense<0.000000e+00> : vector<16xf32>
    %123 = vector.multi_reduction <add>, %118, %cst_51 [1] : vector<16x32xf32> to vector<16xf32>
    %124 = vector.shape_cast %123 : vector<16xf32> to vector<16x1xf32>
    %cst_52 = arith.constant 3.200000e+01 : f32
    %125 = vector.broadcast %cst_52 : f32 to vector<16x1xf32>
    %126 = arith.divf %124, %125 : vector<16x1xf32>
    %127 = vector.broadcast %126 : vector<16x1xf32> to vector<16x32xf32>
    %128 = arith.subf %118, %127 : vector<16x32xf32>
    %129 = arith.mulf %128, %128 : vector<16x32xf32>
    %cst_53 = arith.constant dense<0.000000e+00> : vector<16xf32>
    %130 = vector.multi_reduction <add>, %129, %cst_53 [1] : vector<16x32xf32> to vector<16xf32>
    %131 = vector.shape_cast %130 : vector<16xf32> to vector<16x1xf32>
    %cst_54 = arith.constant 3.200000e+01 : f32
    %132 = vector.broadcast %cst_54 : f32 to vector<16x1xf32>
    %133 = arith.divf %131, %132 : vector<16x1xf32>
    %134 = vector.broadcast %126 : vector<16x1xf32> to vector<16x32xf32>
    %135 = arith.subf %118, %134 : vector<16x32xf32>
    %cst_55 = arith.constant 9.99999974E-6 : f32
    %136 = vector.broadcast %cst_55 : f32 to vector<16x1xf32>
    %137 = arith.addf %133, %136 : vector<16x1xf32>
    %138 = math.rsqrt %137 : vector<16x1xf32>
    %139 = vector.broadcast %138 : vector<16x1xf32> to vector<16x32xf32>
    %140 = arith.mulf %135, %139 : vector<16x32xf32>
    %141 = vector.broadcast %120 : vector<1x32xf32> to vector<16x32xf32>
    %142 = arith.mulf %140, %141 : vector<16x32xf32>
    %143 = vector.broadcast %122 : vector<1x32xf32> to vector<16x32xf32>
    %144 = arith.addf %142, %143 : vector<16x32xf32>
    %145 = arith.truncf %144 : vector<16x32xf32> to vector<16x32xbf16>
    %c0_56 = arith.constant 0 : index
    %c0_57 = arith.constant 0 : index
    %c0_58 = arith.constant 0 : index
    %146 = vector.load %arg13[%c0_56, %c0_57, %c0_58] : memref<1x32x128xbf16, #tpu.memory_space<vmem>>, vector<1x32x128xbf16>
    %147 = vector.shape_cast %146 : vector<1x32x128xbf16> to vector<32x128xbf16>
    %c0_59 = arith.constant 0 : index
    %c0_60 = arith.constant 0 : index
    %c0_61 = arith.constant 0 : index
    %148 = vector.load %arg15[%c0_59, %c0_60, %c0_61] : memref<1x128x32xbf16, #tpu.memory_space<vmem>>, vector<1x128x32xbf16>
    %149 = vector.shape_cast %148 : vector<1x128x32xbf16> to vector<128x32xbf16>
    %c0_62 = arith.constant 0 : index
    %c0_63 = arith.constant 0 : index
    %c0_64 = arith.constant 0 : index
    %150 = vector.load %arg14[%c0_62, %c0_63, %c0_64] : memref<1x1x128xf32, #tpu.memory_space<vmem>>, vector<1x1x128xf32>
    %151 = vector.shape_cast %150 : vector<1x1x128xf32> to vector<1x128xf32>
    %cst_65 = arith.constant 0.000000e+00 : f32
    %152 = vector.broadcast %cst_65 : f32 to vector<16x32xf32>
    %cst_66 = arith.constant dense<0.000000e+00> : vector<16x128xf32>
    %153 = tpu.matmul %145, %147, %cst_66 {dimension_numbers = #tpu.dot_dimension_numbers<[1], [0], [0], [1], [0, 0, 1, 1], [], []>} : vector<16x32xbf16>, vector<32x128xbf16>, vector<16x128xf32> -> vector<16x128xf32>
    %154 = vector.broadcast %151 : vector<1x128xf32> to vector<16x128xf32>
    %155 = arith.addf %153, %154 : vector<16x128xf32>
    %cst_67 = arith.constant 0.000000e+00 : f32
    %156 = vector.broadcast %cst_67 : f32 to vector<16x128xf32>
    %157 = arith.maximumf %155, %156 : vector<16x128xf32>
    %158 = arith.truncf %157 : vector<16x128xf32> to vector<16x128xbf16>
    %cst_68 = arith.constant dense<0.000000e+00> : vector<16x32xf32>
    %159 = tpu.matmul %158, %149, %cst_68 {dimension_numbers = #tpu.dot_dimension_numbers<[1], [0], [0], [1], [0, 0, 1, 1], [], []>} : vector<16x128xbf16>, vector<128x32xbf16>, vector<16x32xf32> -> vector<16x32xf32>
    %160 = arith.addf %152, %159 : vector<16x32xf32>
    %c0_69 = arith.constant 0 : index
    %c0_70 = arith.constant 0 : index
    %c0_71 = arith.constant 0 : index
    %161 = vector.load %arg16[%c0_69, %c0_70, %c0_71] : memref<1x1x32xf32, #tpu.memory_space<vmem>>, vector<1x1x32xf32>
    %162 = vector.shape_cast %161 : vector<1x1x32xf32> to vector<1x32xf32>
    %163 = vector.broadcast %162 : vector<1x32xf32> to vector<16x32xf32>
    %164 = arith.addf %160, %163 : vector<16x32xf32>
    %165 = arith.addf %144, %164 : vector<16x32xf32>
    %c0_72 = arith.constant 0 : index
    %c0_73 = arith.constant 0 : index
    %c0_74 = arith.constant 0 : index
    %166 = vector.load %arg17[%c0_72, %c0_73, %c0_74] : memref<1x1x32xf32, #tpu.memory_space<vmem>>, vector<1x1x32xf32>
    %167 = vector.shape_cast %166 : vector<1x1x32xf32> to vector<1x32xf32>
    %c0_75 = arith.constant 0 : index
    %c0_76 = arith.constant 0 : index
    %c0_77 = arith.constant 0 : index
    %168 = vector.load %arg18[%c0_75, %c0_76, %c0_77] : memref<1x1x32xf32, #tpu.memory_space<vmem>>, vector<1x1x32xf32>
    %169 = vector.shape_cast %168 : vector<1x1x32xf32> to vector<1x32xf32>
    %cst_78 = arith.constant dense<0.000000e+00> : vector<16xf32>
    %170 = vector.multi_reduction <add>, %165, %cst_78 [1] : vector<16x32xf32> to vector<16xf32>
    %171 = vector.shape_cast %170 : vector<16xf32> to vector<16x1xf32>
    %cst_79 = arith.constant 3.200000e+01 : f32
    %172 = vector.broadcast %cst_79 : f32 to vector<16x1xf32>
    %173 = arith.divf %171, %172 : vector<16x1xf32>
    %174 = vector.broadcast %173 : vector<16x1xf32> to vector<16x32xf32>
    %175 = arith.subf %165, %174 : vector<16x32xf32>
    %176 = arith.mulf %175, %175 : vector<16x32xf32>
    %cst_80 = arith.constant dense<0.000000e+00> : vector<16xf32>
    %177 = vector.multi_reduction <add>, %176, %cst_80 [1] : vector<16x32xf32> to vector<16xf32>
    %178 = vector.shape_cast %177 : vector<16xf32> to vector<16x1xf32>
    %cst_81 = arith.constant 3.200000e+01 : f32
    %179 = vector.broadcast %cst_81 : f32 to vector<16x1xf32>
    %180 = arith.divf %178, %179 : vector<16x1xf32>
    %181 = vector.broadcast %173 : vector<16x1xf32> to vector<16x32xf32>
    %182 = arith.subf %165, %181 : vector<16x32xf32>
    %cst_82 = arith.constant 9.99999974E-6 : f32
    %183 = vector.broadcast %cst_82 : f32 to vector<16x1xf32>
    %184 = arith.addf %180, %183 : vector<16x1xf32>
    %185 = math.rsqrt %184 : vector<16x1xf32>
    %186 = vector.broadcast %185 : vector<16x1xf32> to vector<16x32xf32>
    %187 = arith.mulf %182, %186 : vector<16x32xf32>
    %188 = vector.broadcast %167 : vector<1x32xf32> to vector<16x32xf32>
    %189 = arith.mulf %187, %188 : vector<16x32xf32>
    %190 = vector.broadcast %169 : vector<1x32xf32> to vector<16x32xf32>
    %191 = arith.addf %189, %190 : vector<16x32xf32>
    %c0_83 = arith.constant 0 : index
    %c0_84 = arith.constant 0 : index
    %192 = vector.load %arg25[%c0_83, %c0_84] : memref<16x32xf32, #tpu.memory_space<vmem>>, vector<16x32xf32>
    tpu.vector_store %arg25[%c0_83, %c0_84], %191 {strides = array<i32>} : memref<16x32xf32, #tpu.memory_space<vmem>>, vector<16x32xf32>,
    %c1_i32 = arith.constant 1 : i32
    %193 = arith.cmpi eq, %arg1, %c1_i32 : i32
    %194 = arith.extui %193 : i1 to i32
    %c0_i32_85 = arith.constant 0 : i32
    %195 = arith.cmpi ne, %194, %c0_i32_85 : i32
    scf.if %195 {
      %196 = vector.shape_cast %191 : vector<16x32xf32> to vector<2x8x32xf32>
      %cst_86 = arith.constant dense<0.000000e+00> : vector<2x32xf32>
      %197 = vector.multi_reduction <add>, %196, %cst_86 [1] : vector<2x8x32xf32> to vector<2x32xf32>
      %cst_87 = arith.constant 8.000000e+00 : f32
      %198 = vector.broadcast %cst_87 : f32 to vector<2x32xf32>
      %199 = arith.divf %197, %198 : vector<2x32xf32>
      %200 = arith.truncf %199 : vector<2x32xf32> to vector<2x32xbf16>
      %c0_88 = arith.constant 0 : index
      %c0_89 = arith.constant 0 : index
      %201 = vector.load %arg19[%c0_88, %c0_89] : memref<32x16xbf16, #tpu.memory_space<vmem>>, vector<32x16xbf16>
      %cst_90 = arith.constant dense<0.000000e+00> : vector<2x16xf32>
      %202 = tpu.matmul %200, %201, %cst_90 {dimension_numbers = #tpu.dot_dimension_numbers<[1], [0], [0], [1], [0, 0, 1, 1], [], []>} : vector<2x32xbf16>, vector<32x16xbf16>, vector<2x16xf32> -> vector<2x16xf32>
      %c0_91 = arith.constant 0 : index
      %c0_92 = arith.constant 0 : index
      %203 = vector.load %arg20[%c0_91, %c0_92] : memref<1x16xf32, #tpu.memory_space<vmem>>, vector<1x16xf32>
      %204 = vector.broadcast %203 : vector<1x16xf32> to vector<2x16xf32>
      %205 = arith.addf %202, %204 : vector<2x16xf32>
      %c0_93 = arith.constant 0 : index
      %c0_94 = arith.constant 0 : index
      %c0_95 = arith.constant 0 : index
      %206 = vector.load %arg23[%c0_93, %c0_94, %c0_95] : memref<1x2x16xf32, #tpu.memory_space<vmem>>, vector<1x2x16xf32>
      %207 = vector.shape_cast %206 : vector<1x2x16xf32> to vector<2x16xf32>
      %208 = vector.shape_cast %205 : vector<2x16xf32> to vector<1x2x16xf32>
      tpu.vector_store %arg23[%c0_93, %c0_94, %c0_95], %208 {strides = array<i32>} : memref<1x2x16xf32, #tpu.memory_space<vmem>>, vector<1x2x16xf32>,
      %c0_96 = arith.constant 0 : index
      %c0_97 = arith.constant 0 : index
      %209 = vector.load %arg21[%c0_96, %c0_97] : memref<32x16xbf16, #tpu.memory_space<vmem>>, vector<32x16xbf16>
      %cst_98 = arith.constant dense<0.000000e+00> : vector<2x16xf32>
      %210 = tpu.matmul %200, %209, %cst_98 {dimension_numbers = #tpu.dot_dimension_numbers<[1], [0], [0], [1], [0, 0, 1, 1], [], []>} : vector<2x32xbf16>, vector<32x16xbf16>, vector<2x16xf32> -> vector<2x16xf32>
      %c0_99 = arith.constant 0 : index
      %c0_100 = arith.constant 0 : index
      %211 = vector.load %arg22[%c0_99, %c0_100] : memref<1x16xf32, #tpu.memory_space<vmem>>, vector<1x16xf32>
      %212 = vector.broadcast %211 : vector<1x16xf32> to vector<2x16xf32>
      %213 = arith.addf %210, %212 : vector<2x16xf32>
      %c0_101 = arith.constant 0 : index
      %c0_102 = arith.constant 0 : index
      %c0_103 = arith.constant 0 : index
      %214 = vector.load %arg24[%c0_101, %c0_102, %c0_103] : memref<1x2x16xf32, #tpu.memory_space<vmem>>, vector<1x2x16xf32>
      %215 = vector.shape_cast %214 : vector<1x2x16xf32> to vector<2x16xf32>
      %216 = vector.shape_cast %213 : vector<2x16xf32> to vector<1x2x16xf32>
      tpu.vector_store %arg24[%c0_101, %c0_102, %c0_103], %216 {strides = array<i32>} : memref<1x2x16xf32, #tpu.memory_space<vmem>>, vector<1x2x16xf32>,
    } else {
    }
    return
  }
  func.func @transform_0(%arg0: i32, %arg1: i32) -> (i32, i32, i32) {
    %c0_i32 = arith.constant 0 : i32
    %c0_i32_0 = arith.constant 0 : i32
    %c0_i32_1 = arith.constant 0 : i32
    return %arg0, %c0_i32, %c0_i32_0 : i32, i32, i32
  }
  func.func @transform_1(%arg0: i32, %arg1: i32) -> (i32, i32, i32) {
    %c0_i32 = arith.constant 0 : i32
    %c0_i32_0 = arith.constant 0 : i32
    %c0_i32_1 = arith.constant 0 : i32
    return %arg1, %c0_i32, %c0_i32_0 : i32, i32, i32
  }
  func.func @transform_2(%arg0: i32, %arg1: i32) -> (i32, i32, i32) {
    %c0_i32 = arith.constant 0 : i32
    %c0_i32_0 = arith.constant 0 : i32
    %c0_i32_1 = arith.constant 0 : i32
    return %arg1, %c0_i32, %c0_i32_0 : i32, i32, i32
  }
  func.func @transform_3(%arg0: i32, %arg1: i32) -> (i32, i32, i32) {
    %c0_i32 = arith.constant 0 : i32
    %c0_i32_0 = arith.constant 0 : i32
    %c0_i32_1 = arith.constant 0 : i32
    return %arg1, %c0_i32, %c0_i32_0 : i32, i32, i32
  }
  func.func @transform_4(%arg0: i32, %arg1: i32) -> (i32, i32, i32) {
    %c0_i32 = arith.constant 0 : i32
    %c0_i32_0 = arith.constant 0 : i32
    %c0_i32_1 = arith.constant 0 : i32
    return %arg1, %c0_i32, %c0_i32_0 : i32, i32, i32
  }
  func.func @transform_5(%arg0: i32, %arg1: i32) -> (i32, i32, i32) {
    %c0_i32 = arith.constant 0 : i32
    %c0_i32_0 = arith.constant 0 : i32
    %c0_i32_1 = arith.constant 0 : i32
    return %arg1, %c0_i32, %c0_i32_0 : i32, i32, i32
  }
  func.func @transform_6(%arg0: i32, %arg1: i32) -> (i32, i32, i32) {
    %c0_i32 = arith.constant 0 : i32
    %c0_i32_0 = arith.constant 0 : i32
    %c0_i32_1 = arith.constant 0 : i32
    return %arg1, %c0_i32, %c0_i32_0 : i32, i32, i32
  }
  func.func @transform_7(%arg0: i32, %arg1: i32) -> (i32, i32, i32) {
    %c0_i32 = arith.constant 0 : i32
    %c0_i32_0 = arith.constant 0 : i32
    %c0_i32_1 = arith.constant 0 : i32
    return %arg1, %c0_i32, %c0_i32_0 : i32, i32, i32
  }
  func.func @transform_8(%arg0: i32, %arg1: i32) -> (i32, i32, i32) {
    %c0_i32 = arith.constant 0 : i32
    %c0_i32_0 = arith.constant 0 : i32
    %c0_i32_1 = arith.constant 0 : i32
    return %arg1, %c0_i32, %c0_i32_0 : i32, i32, i32
  }
  func.func @transform_9(%arg0: i32, %arg1: i32) -> (i32, i32, i32) {
    %c0_i32 = arith.constant 0 : i32
    %c0_i32_0 = arith.constant 0 : i32
    %c0_i32_1 = arith.constant 0 : i32
    return %arg1, %c0_i32, %c0_i32_0 : i32, i32, i32
  }
  func.func @transform_10(%arg0: i32, %arg1: i32) -> (i32, i32, i32) {
    %c0_i32 = arith.constant 0 : i32
    %c0_i32_0 = arith.constant 0 : i32
    %c0_i32_1 = arith.constant 0 : i32
    return %arg1, %c0_i32, %c0_i32_0 : i32, i32, i32
  }
  func.func @transform_11(%arg0: i32, %arg1: i32) -> (i32, i32, i32) {
    %c0_i32 = arith.constant 0 : i32
    %c0_i32_0 = arith.constant 0 : i32
    %c0_i32_1 = arith.constant 0 : i32
    return %arg1, %c0_i32, %c0_i32_0 : i32, i32, i32
  }
  func.func @transform_12(%arg0: i32, %arg1: i32) -> (i32, i32, i32) {
    %c0_i32 = arith.constant 0 : i32
    %c0_i32_0 = arith.constant 0 : i32
    %c0_i32_1 = arith.constant 0 : i32
    return %arg1, %c0_i32, %c0_i32_0 : i32, i32, i32
  }
  func.func @transform_13(%arg0: i32, %arg1: i32) -> (i32, i32, i32) {
    %c0_i32 = arith.constant 0 : i32
    %c0_i32_0 = arith.constant 0 : i32
    %c0_i32_1 = arith.constant 0 : i32
    return %arg1, %c0_i32, %c0_i32_0 : i32, i32, i32
  }
  func.func @transform_14(%arg0: i32, %arg1: i32) -> (i32, i32, i32) {
    %c0_i32 = arith.constant 0 : i32
    %c0_i32_0 = arith.constant 0 : i32
    %c0_i32_1 = arith.constant 0 : i32
    return %arg1, %c0_i32, %c0_i32_0 : i32, i32, i32
  }
  func.func @transform_15(%arg0: i32, %arg1: i32) -> (i32, i32, i32) {
    %c0_i32 = arith.constant 0 : i32
    %c0_i32_0 = arith.constant 0 : i32
    %c0_i32_1 = arith.constant 0 : i32
    return %arg1, %c0_i32, %c0_i32_0 : i32, i32, i32
  }
  func.func @transform_16(%arg0: i32, %arg1: i32) -> (i32, i32, i32) {
    %c0_i32 = arith.constant 0 : i32
    %c0_i32_0 = arith.constant 0 : i32
    %c0_i32_1 = arith.constant 0 : i32
    return %arg1, %c0_i32, %c0_i32_0 : i32, i32, i32
  }
  func.func @transform_17(%arg0: i32, %arg1: i32) -> (i32, i32) {
    %c0_i32 = arith.constant 0 : i32
    %c0_i32_0 = arith.constant 0 : i32
    %c0_i32_1 = arith.constant 0 : i32
    return %c0_i32, %c0_i32_0 : i32, i32
  }
  func.func @transform_18(%arg0: i32, %arg1: i32) -> (i32, i32) {
    %c0_i32 = arith.constant 0 : i32
    %c0_i32_0 = arith.constant 0 : i32
    %c0_i32_1 = arith.constant 0 : i32
    return %c0_i32, %c0_i32_0 : i32, i32
  }
  func.func @transform_19(%arg0: i32, %arg1: i32) -> (i32, i32) {
    %c0_i32 = arith.constant 0 : i32
    %c0_i32_0 = arith.constant 0 : i32
    %c0_i32_1 = arith.constant 0 : i32
    return %c0_i32, %c0_i32_0 : i32, i32
  }
  func.func @transform_20(%arg0: i32, %arg1: i32) -> (i32, i32) {
    %c0_i32 = arith.constant 0 : i32
    %c0_i32_0 = arith.constant 0 : i32
    %c0_i32_1 = arith.constant 0 : i32
    return %c0_i32, %c0_i32_0 : i32, i32
  }
  func.func @transform_21(%arg0: i32, %arg1: i32) -> (i32, i32, i32) {
    %c0_i32 = arith.constant 0 : i32
    %c0_i32_0 = arith.constant 0 : i32
    %c0_i32_1 = arith.constant 0 : i32
    return %arg0, %c0_i32, %c0_i32_0 : i32, i32, i32
  }
  func.func @transform_22(%arg0: i32, %arg1: i32) -> (i32, i32, i32) {
    %c0_i32 = arith.constant 0 : i32
    %c0_i32_0 = arith.constant 0 : i32
    %c0_i32_1 = arith.constant 0 : i32
    return %arg0, %c0_i32, %c0_i32_0 : i32, i32, i32
  }
}

</mosaic_0001>

<bundles_post_ra>
// kernel: transformer_encoder_forward.1
= control target key start
LH: loop header
LB: loop body
LE: loop exit
PB: predicated region body
PF: predicated region fallthrough
CT: control target
= control target key end

     0   :  { %s3957_s0 = inlined_call_operand.vmem [shape: bf16[2,8,32], index: 0, kind: input, shape index: {}]   ;;  %s3958_s1 = inlined_call_operand.vmem [shape: bf16[2,32,32], index: 1, kind: input, shape index: {}]   ;;  %s3959_s2 = inlined_call_operand.vmem [shape: f32[2,1,32], index: 2, kind: input, shape index: {}]   ;;  %s3960_s3 = inlined_call_operand.vmem [shape: bf16[2,32,32], index: 3, kind: input, shape index: {}]   ;;  %s3961_s4 = inlined_call_operand.vmem [shape: f32[2,1,32], index: 4, kind: input, shape index: {}]   ;;  %s3962_s5 = inlined_call_operand.vmem [shape: bf16[2,32,32], index: 5, kind: input, shape index: {}]   ;;  %s3963_s6 = inlined_call_operand.vmem [shape: f32[2,1,32], index: 6, kind: input, shape index: {}]   ;;  %s3964_s7 = inlined_call_operand.vmem [shape: bf16[2,32,32], index: 7, kind: input, shape index: {}]   ;;  %s3965_s8 = inlined_call_operand.vmem [shape: f32[2,1,32], index: 8, kind: input, shape index: {}]   ;;  %s3966_s9 = inlined_call_operand.vmem [shape: f32[2,1,32], index: 9, kind: input, shape index: {}]   ;;  %s3967_s10 = inlined_call_operand.vmem [shape: f32[2,1,32], index: 10, kind: input, shape index: {}]   ;;  %s3968_s11 = inlined_call_operand.vmem [shape: bf16[2,32,128], index: 11, kind: input, shape index: {}]   ;;  %s3969_s12 = inlined_call_operand.vmem [shape: f32[2,1,128], index: 12, kind: input, shape index: {}]   ;;  %s3970_s13 = inlined_call_operand.vmem [shape: bf16[2,128,32], index: 13, kind: input, shape index: {}]   ;;  %s3971_s14 = inlined_call_operand.vmem [shape: f32[2,1,32], index: 14, kind: input, shape index: {}]   ;;  %s3972_s15 = inlined_call_operand.vmem [shape: f32[2,1,32], index: 15, kind: input, shape index: {}]   ;;  %s3973_s16 = inlined_call_operand.vmem [shape: f32[2,1,32], index: 16, kind: input, shape index: {}]   ;;  %s3974_s17 = inlined_call_operand.vmem [shape: bf16[32,16], index: 17, kind: input, shape index: {}]   ;;  %s3975_s18 = inlined_call_operand.vmem [shape: f32[1,16], index: 18, kind: input, shape index: {}]   ;;  %s3976_s19 = inlined_call_operand.vmem [shape: bf16[32,16], index: 19, kind: input, shape index: {}]   ;;  %s3977_s20 = inlined_call_operand.vmem [shape: f32[1,16], index: 20, kind: input, shape index: {}]   ;;  %s3978_s21 = inlined_call_operand.hbm [shape: f32[1,2,16], index: 21, kind: output, shape index: {0}]   ;;  %s3979_s22 = inlined_call_operand.hbm [shape: f32[1,2,16], index: 22, kind: output, shape index: {1}]  }
   0x1   :  { %3985 = sst [smem:[#allocation13_spill]] %s3957_s0 }
   0x2   :  { %3986 = sst [smem:[#allocation14_spill]] %s3958_s1 }
   0x3   :  { %3987 = sst [smem:[#allocation15_spill]] %s3959_s2 }
   0x4   :  { %3988 = sst [smem:[#allocation16_spill]] %s3960_s3 }
   0x5   :  { %3989 = sst [smem:[#allocation17_spill]] %s3961_s4 }
   0x6   :  { %3990 = sst [smem:[#allocation18_spill]] %s3962_s5 }
   0x7   :  { %3991 = sst [smem:[#allocation19_spill]] %s3963_s6 }
   0x8   :  { %3992 = sst [smem:[#allocation20_spill]] %s3964_s7 }
   0x9   :  { %3993 = sst [smem:[#allocation21_spill]] %s3973_s16 }
   0xa   :  { %3994 = sst [smem:[#allocation22_spill]] %s3974_s17 }
   0xb   :  { %3995 = sst [smem:[#allocation23_spill]] %s3975_s18 }
   0xc   :  { %3996 = sst [smem:[#allocation24_spill]] %s3976_s19 }
   0xd   :  { %3997 = sst [smem:[#allocation25_spill]] %s3977_s20 }
   0xe   :  { %3998 = sst [smem:[#allocation26_spill]] %s3978_s21 }
   0xf   :  { %3999 = sst [smem:[#allocation27_spill]] %s3979_s22 }
  0x10   :  { %28 = vsyncpa [#allocation4], 0 }
  0x11   :  { %29 = vsyncpa [#allocation6], 0  ;;  %s3512_s3 = smov 0   ;;  %s3514_s28 = smov 0  }
  0x12   :  { %s3516_s29 = smov 0  }
  0x13 LB: > { %4000 = sst [smem:[#allocation9_spill]] %s3375_s3  ;;  %s44_s4 = sadd.s32 1, %s3379_s28  ;;  %s3383_s29 = sphi %s3516_s29, %s35_s29   ;;  %s3379_s28 = sphi %s3514_s28, %s4038_s28   ;;  %s3375_s3 = sphi %s3512_s3, %s4037_s3  }
  0x14   : > { %4001 = sst [smem:[#allocation10_spill]] %s3379_s28  ;;  %p45_p0 = scmp.ge.s32.totalorder %s44_s4, 2 }
  0x15   : > { %4002 = sst [smem:[#allocation11_spill]] %s3383_s29  ;;  %p2846_p1 = scmp.ge.s32.totalorder %s3383_s29, 1 }
  0x16   : > { %p770_p2 = scmp.lt.s32.totalorder %s3383_s29, 3  ;;  %s4040_s4 = smov (%p45_p0, %s44_s4), 0 }
  0x17   : > { %4003 = sst [smem:[#allocation12_spill]] %s4040_s4 }
  0x18   : > { %p771_p3 = pnand %p2846_p1, %p770_p2 }
  0x19   : > { %p893_p4 = scmp.lt.s32.totalorder (!%p771_p3), %s3375_s3, 1  ;;  %s4005_s2 = sld [smem:[#allocation14_spill]] (!%p771_p3) }
  0x1a   : > { %774 = sbr.rel (%p771_p3) target bundleno = 4124 (0x101c), region = 104  ;;  %s4006_s28 = sld [smem:[#allocation16_spill]] (!%p771_p3) }
  0x1b   : > { %s4010_s7 = sld [smem:[#allocation20_spill]] (!%p771_p3) }
  0x1c   : > { %s4011_s29 = sld [smem:[#allocation21_spill]] (!%p771_p3) }
  0x1d   : > { %s4012_s24 = sld [smem:[#allocation9_spill]] (!%p771_p3) }
  0x1f   : > { %s3535_s0 = scalar_select %p893_p4, %s3375_s3, 1 }
  0x20   : > { %s4008_s3 = sld [smem:[#allocation18_spill]] }
  0x21   : > { %s2930_s23 = sshll.u32 %s3535_s0, 4  ;;  %s2935_s25 = sshll.u32 %s3535_s0, 6 }
  0x22   : > { %s897_s27 = scalar_lea.vmem %s4005_s2, %s2930_s23  ;;  %s3548_s22 = scalar_lea.vmem %s4006_s28, %s2930_s23 }
  0x23   : > { %s3566_s16 = scalar_lea.vmem %s4010_s7, %s2930_s23  ;;  %s3583_s6 = scalar_lea.vmem %s3968_s11, %s2930_s23 }
  0x24   : > { %s3593_s4 = scalar_lea.vmem %s3970_s13, %s2935_s25  ;;  %s946_s17 = scalar_lea.vmem %s3971_s14, %s3535_s0 }
  0x25   : > { %s949_s18 = scalar_lea.vmem %s3972_s15, %s3535_s0  ;;  %s952_s7 = scalar_lea.vmem %s4011_s29, %s3535_s0 }
  0x26   : > { %s3557_s1 = scalar_lea.vmem %s4008_s3, %s2930_s23  ;;  %p2859_p5 = scmp.ne.s32.totalorder %s4012_s24, 0 }
  0x27   : > { %s4013_s28 = sld [smem:[#allocation13_spill]] (!%p2859_p5) }
  0x28   : > { %957 = sbr.rel (%p2859_p5) target bundleno = 49 (0x31), region = 108 }
  0x2d   : > { %v2943_v0 = vld [vmem:[%s4013_s28] sm:$0xff]   ;;  %vm962_vm0 = vcmask 261120  }
  0x2e   : > { %v2944_v1 = vunpack.c.l.bf16 %v2943_v0  ;;  %v2945_v2 = vunpack.c.h.bf16 %v2943_v0 }
  0x30   : > { %963 = vst.msk [vmem:[#allocation2] sm:$0xff] %vm962_vm0, %v2944_v1  ;;  %964 = vst.msk [vmem:[#allocation2 + $0x8] sm:$0xff] %vm962_vm0, %v2945_v2 }
  0x31 PF: > { %v3243_v3 = vld [vmem:[%s897_s27 + $0x8] sm:$0xff]   ;;  %v3385_v4 = vmov 0.0   ;;  %v3244_v5 = vld [vmem:[%s897_s27] sm:$0xff]   ;;  %vm3386_vm1 = vmmov 0   ;;  %vm991_vm2 = vcmask 261120   ;;  %s4014_s25 = sld [smem:[#allocation17_spill]]  ;;  %s4021_s3 = scalar_lea.vmem %s3966_s9, %s3535_s0 }
  0x32   : > { %3008 = vmatprep.subr.bf16.mxu0 %v3385_v4  ;;  %3032 = vmatprep.subr.bf16.mxu1 %v3385_v4  ;;  %v3245_v8 = vld [vmem:[%s3548_s22 + $0x8] sm:$0xff]   ;;  %v3246_v10 = vld [vmem:[%s3548_s22] sm:$0xff]   ;;  %vm1182_vm3 = vcmask 64512   ;;  %s4016_s2 = sld [smem:[#allocation15_spill]]  ;;  %s3387_s21 = smov 120   ;;  %vm1302_vm4 = vcmask 1043456  }
  0x33   : > { %3009 = vmatpush3.bf16.msra.mxu0 %v3243_v3  ;;  %3012 = vmatprep.mubr.msk.bf16.mxu0 %vm3386_vm1, %v3385_v4  ;;  %v3247_v11 = vld [vmem:[%s3557_s1 + $0x8] sm:$0xff]   ;;  %v3248_v12 = vld [vmem:[%s3557_s1] sm:$0xff]   ;;  %s4018_s23 = sld [smem:[#allocation19_spill]]  ;;  %s3388_s24 = smov 112   ;;  %vm2078_vm5 = vcmask 130048   ;;  %vm2081_vm6 = vcmask 195584  }
  0x34   : > { %3010 = vmatprep.subr.bf16.mxu0 %v3385_v4  ;;  %3034 = vmatprep.mubr.msk.bf16.mxu1 %vm3386_vm1, %v3385_v4  ;;  %s3389_s26 = smov 104   ;;  %s3390_s28 = smov 8  }
  0x35   : > { %s3391_s22 = smov 16   ;;  %s3392_s27 = smov 24  }
  0x37   : > { %v3615_v6 = vld [vmem:[#allocation2] sm:$0xff]  ;;  %v3617_v7 = vld [vmem:[#allocation2 + $0x8] sm:$0xff]  ;;  %3011 = vmatpush3.bf16.msra.mxu0 %v3244_v5  ;;  %s4015_s29 = scalar_lea.vmem %s4014_s25, %s3535_s0 }
  0x38   : > { %v967_v9 = vpack.c.bf16 %v3617_v7, %v3615_v6  ;;  %3016 = vmatprep.subr.bf16.mxu0 %v3385_v4  ;;  %v2864_v17 = vld [vmem:[%s4015_s29] ss:$0 sm:$0xff]  ;;  %s4017_s30 = scalar_lea.vmem %s4016_s2, %s3535_s0  ;;  %s4020_s29 = scalar_lea.vmem %s3965_s8, %s3535_s0 }
  0x39   : > { %v2860_v22 = vld [vmem:[%s4017_s30] ss:$0 sm:$0xff]  ;;  %s4019_s5 = scalar_lea.vmem %s4018_s23, %s3535_s0  ;;  %s4023_s23 = scalar_lea.vmem %s3969_s12, %s3535_s0 }
  0x3a   : > { %3013 = vmatmul.mubr.msk.bf16.vlgmr.msra.gmra.mxu0 %vm991_vm2, %v967_v9  ;;  %v2868_v33 = vld [vmem:[%s4019_s5] ss:$0 sm:$0xff] }
  0x3b   : > { %3017 = vmatpush3.bf16.msra.mxu0 %v3245_v8  ;;  %3020 = vmatprep.mubr.msk.bf16.mxu0 %vm3386_vm1, %v3385_v4 }
  0x3c   : > { %3018 = vmatprep.subr.bf16.mxu0 %v3385_v4 }
  0x3f   : > { %3019 = vmatpush3.bf16.msra.mxu0 %v3246_v10 }
  0x40   : > { %3024 = vmatprep.subr.bf16.mxu0 %v3385_v4 }
  0x42   : > { %3021 = vmatmul.mubr.msk.bf16.vlgmr.msra.gmra.mxu0 %vm991_vm2, %v967_v9 }
  0x43   : > { %3028 = vmatprep.mubr.msk.bf16.mxu0 %vm3386_vm1, %v3385_v4  ;;  %3025 = vmatpush3.bf16.msra.mxu0 %v3247_v11 }
  0x44   : > { %3026 = vmatprep.subr.bf16.mxu0 %v3385_v4 }
  0x47   : > { %3027 = vmatpush3.bf16.msra.mxu0 %v3248_v12 }
  0x48   : > { %3038 = vmatprep.subr.bf16.mxu0 %v3385_v4 }
  0x4a   : > { %3029 = vmatmul.mubr.msk.bf16.vlgmr.msra.gmra.mxu0 %vm991_vm2, %v967_v9 }
  0x4b   : > { %3040 = vmatprep.mubr.msk.bf16.mxu0 %vm3386_vm1, %v3385_v4 }
  0xfa   : > { %v1029_v13 = vpop.f32.mrf.mxu0 }
  0xfb   : > { %v1030_v27 = vadd.f32 %v2860_v22, %v1029_v13 }
  0xfc   : > { %v3014_v14 = vpop.f32.mrf.mxu0 }
  0xfd   : > { %v3663_v30 = vpack.c.bf16 %v1030_v27, %v1030_v27 }
  0xfe   : > { %v1032_v15 = vpop.f32.mrf.mxu0 }
  0xff   : > { %v1033_v31 = vadd.f32 %v2860_v22, %v1032_v15 }
 0x100   : > { %v3015_v16 = vpop.f32.mrf.mxu0 }
 0x101   : > { %v3670_v32 = vpack.c.bf16 %v1033_v31, %v1033_v31 }
 0x102   : > { %v1094_v18 = vpop.f32.mrf.mxu0 }
 0x103   : > { %v1095_v19 = vadd.f32 %v2864_v17, %v1094_v18 }
 0x104   : > { %v3022_v20 = vpop.f32.mrf.mxu0 }
 0x105   : > { %v3647_v21 = vpack.c.bf16 %v1095_v19, %v1095_v19 }
 0x106   : > { %v1097_v23 = vpop.f32.mrf.mxu0 }
 0x107   : > { %v1098_v24 = vadd.f32 %v2864_v17, %v1097_v23  ;;  %v1187_v25 = vsel %vm1182_vm3, %v3647_v21, 0 }
 0x108   : > { %v3023_v26 = vpop.f32.mrf.mxu0  ;;  %3033 = vmatpush3.bf16.xpose.msra.mxu1 %v1187_v25 }
 0x109   : > { %v3656_v28 = vpack.c.bf16 %v1098_v24, %v1098_v24  ;;  %3044 = vmatprep.subr.bf16.mxu1 %v3385_v4 }
 0x10a   : > { %v1159_v34 = vpop.f32.mrf.mxu0 }
 0x10b   : > { %1444 = vrot.lane.b32.xlu1 %v3656_v28, %s3387_s21  ;;  %v1233_v29 = vsel %vm1182_vm3, %v3656_v28, 0  ;;  %v1160_v36 = vadd.f32 %v2868_v33, %v1159_v34 }
 0x10c   : > { %3039 = vmatpush3.bf16.xpose.msra.mxu0 %v1233_v29  ;;  %v3030_v35 = vpop.f32.mrf.mxu0 }
 0x10d   : > { %3050 = vmatprep.subr.bf16.mxu0 %v3385_v4  ;;  %v3681_v40 = vpack.c.bf16 %v1160_v36, %v1160_v36 }
 0x10e   : > { %v1162_v37 = vpop.f32.mrf.mxu0 }
 0x10f   : > { %3035 = vmatmul.mubr.msk.bf16.vlgmr.msra.gmra.mxu1 %vm1182_vm3, %v3663_v30  ;;  %v1163_v38 = vadd.f32 %v2868_v33, %v1162_v37  ;;  %v1304_v42 = vsel %vm1302_vm4, %v3681_v40, 0 }
 0x110   : > { %3046 = vmatprep.mubr.msk.bf16.mxu1 %vm3386_vm1, %v3385_v4  ;;  %v3031_v39 = vpop.f32.mrf.mxu0  ;;  %3045 = vmatpush3.bf16.msra.mxu1 %v1304_v42 }
 0x111   : > { %v3683_v41 = vpack.c.bf16 %v1163_v38, %v1163_v38  ;;  %3056 = vmatprep.subr.bf16.mxu1 %v3385_v4 }
 0x113   : > { %3041 = vmatmul.mubr.msk.bf16.vlgmr.msra.gmra.mxu0 %vm1182_vm3, %v3670_v32  ;;  %v1350_v43 = vsel %vm1302_vm4, %v3683_v41, 0 }
 0x114   : > { %3052 = vmatprep.mubr.msk.bf16.mxu0 %vm3386_vm1, %v3385_v4  ;;  %3051 = vmatpush3.bf16.msra.mxu0 %v1350_v43 }
 0x115   : > { %3062 = vmatprep.subr.bf16.mxu0 %v3385_v4 }
 0x17d   : > { %v1445_v0 = vpop.permute.xlu1 %1444 }
 0x17e   : > { %v1450_v14 = vsel %vm1182_vm3, %v1445_v0, 0 }
 0x1cf   : > { %v1223_v44 = vpop.f32.mrf.mxu1 }
 0x1d0   : > { %v1275_v45 = vsel %vm1182_vm3, %v1223_v44, -inf }
 0x1d1   : > { %1276 = vmax.xlane.f32.xlu0 %v1275_v45  ;;  %v3036_v46 = vpop.f32.mrf.mxu1 }
 0x1d3   : > { %v1226_v47 = vpop.f32.mrf.mxu1  ;;  %v1269_v48 = vpop.f32.mrf.mxu0 }
 0x1d4   : > { %v1278_v49 = vsel %vm1182_vm3, %v1269_v48, -inf }
 0x1d5   : > { %v3037_v50 = vpop.f32.mrf.mxu1  ;;  %1279 = vmax.xlane.f32.xlu0 %v1278_v49  ;;  %v3042_v51 = vpop.f32.mrf.mxu0 }
 0x1d7   : > { %v1272_v52 = vpop.f32.mrf.mxu0 }
 0x1d9   : > { %v3043_v53 = vpop.f32.mrf.mxu0 }
 0x1eb   : > { %1394 = vrot.lane.b32.xlu0 %v3647_v21, %s3387_s21 }
 0x25a   : > { %v1277_v54 = vpop.xlane.xlu0 %1276 }
 0x25b   : > { %v1281_v55 = vsub.f32 %v1223_v44, %v1277_v54 }
 0x25d   : > { %v1283_v56 = vmul.f32 1.442695, %v1281_v55 }
 0x25e   : > { %v1280_v57 = vpop.xlane.xlu0 %1279 }
 0x25f   : > { %3261 = vpow2.f32 %v1283_v56  ;;  %v1282_v58 = vsub.f32 %v1269_v48, %v1280_v57 }
 0x261   : > { %v1285_v59 = vmul.f32 1.442695, %v1282_v58 }
 0x262   : > { %v1395_v8 = vpop.permute.xlu0 %1394 }
 0x263   : > { %3263 = vpow2.f32 %v1285_v59  ;;  %v1400_v11 = vsel %vm1182_vm3, %v1395_v8, 0 }
 0x26c   : > { %v3262_v60 = vpop.eup %3261 }
 0x26d   : > { %v1287_v61 = vsel %vm1182_vm3, %v3262_v60, 0.0 }
 0x26e   : > { %1288 = vadd.xlane.f32.xlu1 %v1287_v61 }
 0x270   : > { %v3264_v62 = vpop.eup %3263 }
 0x271   : > { %v1290_v63 = vsel %vm1182_vm3, %v3264_v62, 0.0 }
 0x272   : > { %1291 = vadd.xlane.f32.xlu1 %v1290_v63 }
 0x283   : > { %1392 = vrot.lane.b32.xlu1 %v3663_v30, %s3387_s21 }
 0x287   : > { %1442 = vrot.lane.b32.xlu1 %v3670_v32, %s3387_s21 }
 0x2f7   : > { %v1289_v1 = vpop.xlane.xlu1 %1288 }
 0x2f8   : > { %3265 = vrcp.f32 %v1289_v1 }
 0x2fb   : > { %v1292_v2 = vpop.xlane.xlu1 %1291 }
 0x2fc   : > { %3267 = vrcp.f32 %v1292_v2 }
 0x2ff   : > { %v1393_v15 = vpop.permute.xlu1 %1392 }
 0x303   : > { %v1443_v16 = vpop.permute.xlu1 %1442 }
 0x305   : > { %v3266_v3 = vpop.eup %3265 }
 0x306   : > { %v1295_v5 = vmul.f32 %v3266_v3, %v3262_v60 }
 0x308   : > { %v1297_v9 = vpack.c.bf16 %v1295_v5, %v1295_v5 }
 0x309   : > { %v3268_v10 = vpop.eup %3267 }
 0x30a   : > { %3047 = vmatmul.mubr.msk.bf16.vlgmr.msra.gmra.mxu1 %vm1182_vm3, %v1297_v9  ;;  %v1296_v12 = vmul.f32 %v3268_v10, %v3264_v62 }
 0x30b   : > { %3057 = vmatpush3.bf16.xpose.msra.mxu1 %v1400_v11  ;;  %3058 = vmatprep.mubr.msk.bf16.mxu1 %vm3386_vm1, %v3385_v4 }
 0x30c   : > { %v1298_v13 = vpack.c.bf16 %v1296_v12, %v1296_v12  ;;  %3068 = vmatprep.subr.bf16.mxu1 %v3385_v4 }
 0x30e   : > { %3053 = vmatmul.mubr.msk.bf16.vlgmr.msra.gmra.mxu0 %vm1182_vm3, %v1298_v13 }
 0x30f   : > { %3063 = vmatpush3.bf16.xpose.msra.mxu0 %v1450_v14  ;;  %3064 = vmatprep.mubr.msk.bf16.mxu0 %vm3386_vm1, %v3385_v4 }
 0x310   : > { %3074 = vmatprep.subr.bf16.mxu0 %v3385_v4 }
 0x312   : > { %3059 = vmatmul.mubr.msk.bf16.vlgmr.msra.gmra.mxu1 %vm1182_vm3, %v1393_v15 }
 0x313   : > { %3070 = vmatprep.mubr.msk.bf16.mxu1 %vm3386_vm1, %v3385_v4 }
 0x316   : > { %3065 = vmatmul.mubr.msk.bf16.vlgmr.msra.gmra.mxu0 %vm1182_vm3, %v1443_v16 }
 0x317   : > { %3076 = vmatprep.mubr.msk.bf16.mxu0 %vm3386_vm1, %v3385_v4 }
 0x3ca   : > { %v3717_v17 = vpop.f32.mrf.mxu1 }
 0x3cc   : > { %v3048_v18 = vpop.f32.mrf.mxu1 }
 0x3ce   : > { %v1343_v19 = vpop.f32.mrf.mxu1  ;;  %v3719_v20 = vpop.f32.mrf.mxu0 }
 0x3d0   : > { %v3049_v22 = vpop.f32.mrf.mxu1  ;;  %v3054_v23 = vpop.f32.mrf.mxu0 }
 0x3d2   : > { %v1389_v24 = vpop.f32.mrf.mxu0  ;;  %v1436_v25 = vpop.f32.mrf.mxu1 }
 0x3d3   : > { %v1492_v26 = vsel %vm1182_vm3, %v1436_v25, -inf }
 0x3d4   : > { %1493 = vmax.xlane.f32.xlu0 %v1492_v26  ;;  %v3055_v27 = vpop.f32.mrf.mxu0  ;;  %v3060_v29 = vpop.f32.mrf.mxu1 }
 0x3d6   : > { %v1439_v31 = vpop.f32.mrf.mxu1  ;;  %v1486_v33 = vpop.f32.mrf.mxu0 }
 0x3d7   : > { %v1495_v34 = vsel %vm1182_vm3, %v1486_v33, -inf }
 0x3d8   : > { %v3061_v35 = vpop.f32.mrf.mxu1  ;;  %1496 = vmax.xlane.f32.xlu1 %v1495_v34  ;;  %v3066_v36 = vpop.f32.mrf.mxu0 }
 0x3da   : > { %v1489_v37 = vpop.f32.mrf.mxu0 }
 0x3dc   : > { %v3067_v38 = vpop.f32.mrf.mxu0 }
 0x3e9   : > { %1564 = vrot.lane.b32.xlu1 %v3683_v41, %s3387_s21 }
 0x3ed   : > { %1614 = vrot.lane.b32.xlu1 %v3647_v21, %s3388_s24 }
 0x3f1   : > { %1664 = vrot.lane.b32.xlu1 %v3656_v28, %s3388_s24 }
 0x3f5   : > { %1662 = vrot.lane.b32.xlu1 %v3670_v32, %s3388_s24 }
 0x45d   : > { %v1494_v39 = vpop.xlane.xlu0 %1493 }
 0x45e   : > { %v1498_v42 = vsub.f32 %v1436_v25, %v1494_v39 }
 0x460   : > { %v1500_v43 = vmul.f32 1.442695, %v1498_v42 }
 0x461   : > { %v1497_v44 = vpop.xlane.xlu1 %1496 }
 0x462   : > { %3269 = vpow2.f32 %v1500_v43  ;;  %v1499_v45 = vsub.f32 %v1486_v33, %v1497_v44 }
 0x464   : > { %v1502_v46 = vmul.f32 1.442695, %v1499_v45 }
 0x465   : > { %v1565_v47 = vpop.permute.xlu1 %1564 }
 0x466   : > { %3271 = vpow2.f32 %v1502_v46  ;;  %v1570_v48 = vsel %vm1302_vm4, %v1565_v47, 0 }
 0x467   : > { %3075 = vmatpush3.bf16.msra.mxu0 %v1570_v48 }
 0x468   : > { %3086 = vmatprep.subr.bf16.mxu0 %v3385_v4 }
 0x469   : > { %v1615_v58 = vpop.permute.xlu1 %1614 }
 0x46a   : > { %v1620_v62 = vsel %vm1182_vm3, %v1615_v58, 0 }
 0x46d   : > { %v1665_v0 = vpop.permute.xlu1 %1664 }
 0x46e   : > { %v1670_v2 = vsel %vm1182_vm3, %v1665_v0, 0 }
 0x46f   : > { %v3270_v49 = vpop.eup %3269 }
 0x470   : > { %v1504_v50 = vsel %vm1182_vm3, %v3270_v49, 0.0 }
 0x471   : > { %1505 = vadd.xlane.f32.xlu0 %v1504_v50  ;;  %v1663_v5 = vpop.permute.xlu1 %1662 }
 0x473   : > { %v3272_v51 = vpop.eup %3271 }
 0x474   : > { %v1507_v52 = vsel %vm1182_vm3, %v3272_v51, 0.0 }
 0x475   : > { %1508 = vadd.xlane.f32.xlu0 %v1507_v52 }
 0x48b   : > { %1516 = vrot.lane.b32.xlu0 %v3681_v40, %s3387_s21  ;;  %s4022_s21 = scalar_lea.vmem %s3967_s10, %s3535_s0 }
 0x48f   : > { %1612 = vrot.lane.b32.xlu0 %v3663_v30, %s3388_s24 }
 0x4fa   : > { %v1506_v53 = vpop.xlane.xlu0 %1505 }
 0x4fb   : > { %3273 = vrcp.f32 %v1506_v53 }
 0x4fe   : > { %v1509_v54 = vpop.xlane.xlu0 %1508 }
 0x4ff   : > { %3275 = vrcp.f32 %v1509_v54 }
 0x502   : > { %v1517_v55 = vpop.permute.xlu0 %1516 }
 0x503   : > { %v1522_v56 = vsel %vm1302_vm4, %v1517_v55, 0 }
 0x504   : > { %3069 = vmatpush3.bf16.msra.mxu1 %v1522_v56 }
 0x505   : > { %3080 = vmatprep.subr.bf16.mxu1 %v3385_v4 }
 0x506   : > { %v1613_v3 = vpop.permute.xlu0 %1612 }
 0x508   : > { %v3274_v57 = vpop.eup %3273 }
 0x509   : > { %v1512_v59 = vmul.f32 %v3274_v57, %v3270_v49 }
 0x50b   : > { %v1514_v60 = vpack.c.bf16 %v1512_v59, %v1512_v59 }
 0x50c   : > { %v3276_v61 = vpop.eup %3275 }
 0x50d   : > { %3071 = vmatmul.mubr.msk.bf16.vlgmr.msra.gmra.mxu1 %vm1182_vm3, %v1514_v60  ;;  %v1513_v63 = vmul.f32 %v3276_v61, %v3272_v51 }
 0x50e   : > { %3081 = vmatpush3.bf16.xpose.msra.mxu1 %v1620_v62  ;;  %3082 = vmatprep.mubr.msk.bf16.mxu1 %vm3386_vm1, %v3385_v4 }
 0x50f   : > { %v1515_v1 = vpack.c.bf16 %v1513_v63, %v1513_v63  ;;  %3092 = vmatprep.subr.bf16.mxu1 %v3385_v4 }
 0x511   : > { %3077 = vmatmul.mubr.msk.bf16.vlgmr.msra.gmra.mxu0 %vm1182_vm3, %v1515_v1 }
 0x512   : > { %3087 = vmatpush3.bf16.xpose.msra.mxu0 %v1670_v2  ;;  %3088 = vmatprep.mubr.msk.bf16.mxu0 %vm3386_vm1, %v3385_v4 }
 0x513   : > { %3098 = vmatprep.subr.bf16.mxu0 %v3385_v4 }
 0x515   : > { %3083 = vmatmul.mubr.msk.bf16.vlgmr.msra.gmra.mxu1 %vm1182_vm3, %v1613_v3 }
 0x516   : > { %3094 = vmatprep.mubr.msk.bf16.mxu1 %vm3386_vm1, %v3385_v4 }
 0x519   : > { %3089 = vmatmul.mubr.msk.bf16.vlgmr.msra.gmra.mxu0 %vm1182_vm3, %v1663_v5 }
 0x51a   : > { %3100 = vmatprep.mubr.msk.bf16.mxu0 %vm3386_vm1, %v3385_v4 }
 0x5cd   : > { %v3757_v8 = vpop.f32.mrf.mxu1 }
 0x5cf   : > { %v3072_v9 = vpop.f32.mrf.mxu1 }
 0x5d1   : > { %v1561_v10 = vpop.f32.mrf.mxu1  ;;  %v3759_v11 = vpop.f32.mrf.mxu0 }
 0x5d2   : > { %v3228_v12 = vpack.i.bf16 %v3759_v11, %v3757_v8 }
 0x5d3   : > { %v3073_v13 = vpop.f32.mrf.mxu1  ;;  %v3078_v14 = vpop.f32.mrf.mxu0 }
 0x5d5   : > { %v1609_v15 = vpop.f32.mrf.mxu0  ;;  %v1656_v16 = vpop.f32.mrf.mxu1 }
 0x5d6   : > { %v1712_v18 = vsel %vm1182_vm3, %v1656_v16, -inf }
 0x5d7   : > { %1713 = vmax.xlane.f32.xlu0 %v1712_v18  ;;  %v3079_v19 = vpop.f32.mrf.mxu0  ;;  %v3084_v22 = vpop.f32.mrf.mxu1 }
 0x5d9   : > { %v1659_v23 = vpop.f32.mrf.mxu1  ;;  %v1706_v24 = vpop.f32.mrf.mxu0 }
 0x5da   : > { %v1715_v25 = vsel %vm1182_vm3, %v1706_v24, -inf }
 0x5db   : > { %v3085_v26 = vpop.f32.mrf.mxu1  ;;  %1716 = vmax.xlane.f32.xlu1 %v1715_v25  ;;  %v3090_v27 = vpop.f32.mrf.mxu0 }
 0x5dd   : > { %v1709_v29 = vpop.f32.mrf.mxu0 }
 0x5df   : > { %v3091_v31 = vpop.f32.mrf.mxu0 }
 0x5ec   : > { %1784 = vrot.lane.b32.xlu1 %v3683_v41, %s3388_s24 }
 0x5f0   : > { %1834 = vrot.lane.b32.xlu1 %v3647_v21, %s3389_s26 }
 0x5f4   : > { %1884 = vrot.lane.b32.xlu1 %v3656_v28, %s3389_s26 }
 0x5f8   : > { %1882 = vrot.lane.b32.xlu1 %v3670_v32, %s3389_s26 }
 0x660   : > { %v1714_v33 = vpop.xlane.xlu0 %1713 }
 0x661   : > { %v1718_v34 = vsub.f32 %v1656_v16, %v1714_v33 }
 0x663   : > { %v1720_v35 = vmul.f32 1.442695, %v1718_v34 }
 0x664   : > { %v1717_v36 = vpop.xlane.xlu1 %1716 }
 0x665   : > { %3277 = vpow2.f32 %v1720_v35  ;;  %v1719_v37 = vsub.f32 %v1706_v24, %v1717_v36 }
 0x667   : > { %v1722_v38 = vmul.f32 1.442695, %v1719_v37 }
 0x668   : > { %v1785_v39 = vpop.permute.xlu1 %1784 }
 0x669   : > { %3279 = vpow2.f32 %v1722_v38  ;;  %v1790_v42 = vsel %vm1302_vm4, %v1785_v39, 0 }
 0x66a   : > { %3099 = vmatpush3.bf16.msra.mxu0 %v1790_v42 }
 0x66b   : > { %3110 = vmatprep.subr.bf16.mxu0 %v3385_v4 }
 0x66c   : > { %v1835_v49 = vpop.permute.xlu1 %1834 }
 0x66d   : > { %v1840_v53 = vsel %vm1182_vm3, %v1835_v49, 0 }
 0x670   : > { %v1885_v54 = vpop.permute.xlu1 %1884 }
 0x671   : > { %v1890_v56 = vsel %vm1182_vm3, %v1885_v54, 0 }
 0x672   : > { %v3278_v21 = vpop.eup %3277 }
 0x673   : > { %v1724_v28 = vsel %vm1182_vm3, %v3278_v21, 0.0 }
 0x674   : > { %1725 = vadd.xlane.f32.xlu0 %v1724_v28  ;;  %v1883_v58 = vpop.permute.xlu1 %1882 }
 0x676   : > { %v3280_v43 = vpop.eup %3279 }
 0x677   : > { %v1727_v32 = vsel %vm1182_vm3, %v3280_v43, 0.0 }
 0x678   : > { %1728 = vadd.xlane.f32.xlu0 %v1727_v32  ;;  %v3250_v32 = vld [vmem:[%s3566_s16] sm:$0xff]  }
 0x68e   : > { %1736 = vrot.lane.b32.xlu0 %v3681_v40, %s3388_s24 }
 0x692   : > { %1832 = vrot.lane.b32.xlu0 %v3663_v30, %s3389_s26 }
 0x6fd   : > { %v1726_v44 = vpop.xlane.xlu0 %1725 }
 0x6fe   : > { %3281 = vrcp.f32 %v1726_v44 }
 0x701   : > { %v1729_v45 = vpop.xlane.xlu0 %1728 }
 0x702   : > { %3283 = vrcp.f32 %v1729_v45 }
 0x705   : > { %v1737_v46 = vpop.permute.xlu0 %1736 }
 0x706   : > { %v1742_v47 = vsel %vm1302_vm4, %v1737_v46, 0 }
 0x707   : > { %3093 = vmatpush3.bf16.msra.mxu1 %v1742_v47 }
 0x708   : > { %3104 = vmatprep.subr.bf16.mxu1 %v3385_v4 }
 0x709   : > { %v1833_v57 = vpop.permute.xlu0 %1832 }
 0x70b   : > { %v3282_v48 = vpop.eup %3281 }
 0x70c   : > { %v1732_v50 = vmul.f32 %v3282_v48, %v3278_v21 }
 0x70e   : > { %v1734_v51 = vpack.c.bf16 %v1732_v50, %v1732_v50 }
 0x70f   : > { %v3284_v52 = vpop.eup %3283 }
 0x710   : > { %3095 = vmatmul.mubr.msk.bf16.vlgmr.msra.gmra.mxu1 %vm1182_vm3, %v1734_v51  ;;  %v1733_v30 = vmul.f32 %v3284_v52, %v3280_v43  ;;  %v3249_v43 = vld [vmem:[%s3566_s16 + $0x8] sm:$0xff]  }
 0x711   : > { %3105 = vmatpush3.bf16.xpose.msra.mxu1 %v1840_v53  ;;  %3106 = vmatprep.mubr.msk.bf16.mxu1 %vm3386_vm1, %v3385_v4 }
 0x712   : > { %v1735_v55 = vpack.c.bf16 %v1733_v30, %v1733_v30  ;;  %3116 = vmatprep.subr.bf16.mxu1 %v3385_v4 }
 0x714   : > { %3101 = vmatmul.mubr.msk.bf16.vlgmr.msra.gmra.mxu0 %vm1182_vm3, %v1735_v55 }
 0x715   : > { %3111 = vmatpush3.bf16.xpose.msra.mxu0 %v1890_v56  ;;  %3112 = vmatprep.mubr.msk.bf16.mxu0 %vm3386_vm1, %v3385_v4 }
 0x716   : > { %3122 = vmatprep.subr.bf16.mxu0 %v3385_v4 }
 0x718   : > { %3107 = vmatmul.mubr.msk.bf16.vlgmr.msra.gmra.mxu1 %vm1182_vm3, %v1833_v57 }
 0x719   : > { %3118 = vmatprep.mubr.msk.bf16.mxu1 %vm3386_vm1, %v3385_v4 }
 0x71c   : > { %3113 = vmatmul.mubr.msk.bf16.vlgmr.msra.gmra.mxu0 %vm1182_vm3, %v1883_v58 }
 0x71d   : > { %3124 = vmatprep.mubr.msk.bf16.mxu0 %vm3386_vm1, %v3385_v4 }
 0x7d0   : > { %v1778_v59 = vpop.f32.mrf.mxu1 }
 0x7d2   : > { %v3096_v60 = vpop.f32.mrf.mxu1 }
 0x7d4   : > { %v1781_v61 = vpop.f32.mrf.mxu1  ;;  %v1826_v62 = vpop.f32.mrf.mxu0 }
 0x7d5   : > { %v3233_v22 = vpack.i.bf16 %v1826_v62, %v1778_v59 }
 0x7d6   : > { %v3097_v63 = vpop.f32.mrf.mxu1  ;;  %v3102_v0 = vpop.f32.mrf.mxu0 }
 0x7d8   : > { %v1829_v1 = vpop.f32.mrf.mxu0  ;;  %v1876_v2 = vpop.f32.mrf.mxu1 }
 0x7d9   : > { %v1932_v3 = vsel %vm1182_vm3, %v1876_v2, -inf }
 0x7da   : > { %1933 = vmax.xlane.f32.xlu0 %v1932_v3  ;;  %v3103_v5 = vpop.f32.mrf.mxu0  ;;  %v3108_v9 = vpop.f32.mrf.mxu1 }
 0x7dc   : > { %v1879_v10 = vpop.f32.mrf.mxu1  ;;  %v1926_v13 = vpop.f32.mrf.mxu0 }
 0x7dd   : > { %v1935_v14 = vsel %vm1182_vm3, %v1926_v13, -inf }
 0x7de   : > { %v3109_v15 = vpop.f32.mrf.mxu1  ;;  %1936 = vmax.xlane.f32.xlu1 %v1935_v14  ;;  %v3114_v16 = vpop.f32.mrf.mxu0 }
 0x7e0   : > { %v1929_v18 = vpop.f32.mrf.mxu0 }
 0x7e2   : > { %v3115_v19 = vpop.f32.mrf.mxu0 }
 0x7ef   : > { %2004 = vrot.lane.b32.xlu1 %v3683_v41, %s3389_s26 }
 0x7f3   : > { %3229 = vrot.lane.b32.xlu1 %v3228_v12, %s3390_s28 }
 0x7f7   : > { %3234 = vrot.lane.b32.xlu1 %v3233_v22, %s3391_s22 }
 0x863   : > { %v1934_v23 = vpop.xlane.xlu0 %1933 }
 0x864   : > { %v1938_v24 = vsub.f32 %v1876_v2, %v1934_v23 }
 0x866   : > { %v1940_v25 = vmul.f32 1.442695, %v1938_v24 }
 0x867   : > { %v1937_v26 = vpop.xlane.xlu1 %1936 }
 0x868   : > { %3285 = vpow2.f32 %v1940_v25  ;;  %v1939_v27 = vsub.f32 %v1926_v13, %v1937_v26 }
 0x86a   : > { %v1942_v29 = vmul.f32 1.442695, %v1939_v27 }
 0x86b   : > { %v2005_v31 = vpop.permute.xlu1 %2004 }
 0x86c   : > { %3287 = vpow2.f32 %v1942_v29  ;;  %v2010_v33 = vsel %vm1302_vm4, %v2005_v31, 0 }
 0x86d   : > { %3123 = vmatpush3.bf16.msra.mxu0 %v2010_v33  ;;  %v3251_v33 = vld [vmem:[%s3583_s6 + $0x8] sm:$0xff]  }
 0x86e   : > { %3136 = vmatprep.subr.bf16.mxu0 %v3385_v4 }
 0x86f   : > { %v3230_v53 = vpop.permute.xlu1 %3229 }
 0x870   : > { %v3232_v54 = vunpack.i.h.bf16 %v3230_v53  ;;  %v3231_v55 = vunpack.i.l.bf16 %v3230_v53  ;;  %v3260_v53 = vld [vmem:[%s3593_s4] sm:$0xff]  }
 0x872   : > { %v2077_v59 = vsel %vm1182_vm3, %v3719_v20, %v3232_v54  ;;  %v2076_v60 = vsel %vm1182_vm3, %v3717_v17, %v3231_v55  ;;  %v2894_v20 = vld [vmem:[%s4020_s29] ss:$0 sm:$0xff] }
 0x873   : > { %v3235_v30 = vpop.permute.xlu1 %3234 }
 0x874   : > { %v3237_v56 = vunpack.i.h.bf16 %v3235_v30  ;;  %v3236_v57 = vunpack.i.l.bf16 %v3235_v30  ;;  %v2900_v30 = vld [vmem:[%s4023_s23] ss:$0 sm:$0xff] }
 0x875   : > { %v3286_v41 = vpop.eup %3285 }
 0x876   : > { %v1944_v8 = vsel %vm1182_vm3, %v3286_v41, 0.0  ;;  %v2079_v63 = vsel %vm2078_vm5, %v2076_v60, %v3236_v57  ;;  %v2080_v0 = vsel %vm2078_vm5, %v2077_v59, %v3237_v56 }
 0x877   : > { %1945 = vadd.xlane.f32.xlu0 %v1944_v8  ;;  %v3253_v8 = vld [vmem:[%s3593_s4 + $0x38] sm:$0xff]  }
 0x879   : > { %v3288_v11 = vpop.eup %3287 }
 0x87a   : > { %v1947_v12 = vsel %vm1182_vm3, %v3288_v11, 0.0 }
 0x87b   : > { %1948 = vadd.xlane.f32.xlu0 %v1947_v12  ;;  %v3255_v12 = vld [vmem:[%s3593_s4 + $0x28] sm:$0xff]  }
 0x891   : > { %1956 = vrot.lane.b32.xlu0 %v3681_v40, %s3389_s26 }
 0x900   : > { %v1946_v34 = vpop.xlane.xlu0 %1945 }
 0x901   : > { %3289 = vrcp.f32 %v1946_v34  ;;  %v3256_v34 = vld [vmem:[%s3593_s4 + $0x20] sm:$0xff]  }
 0x904   : > { %v1949_v35 = vpop.xlane.xlu0 %1948 }
 0x905   : > { %3291 = vrcp.f32 %v1949_v35  ;;  %v3257_v35 = vld [vmem:[%s3593_s4 + $0x18] sm:$0xff]  }
 0x908   : > { %v1957_v36 = vpop.permute.xlu0 %1956 }
 0x909   : > { %v1962_v37 = vsel %vm1302_vm4, %v1957_v36, 0 }
 0x90a   : > { %3117 = vmatpush3.bf16.msra.mxu1 %v1962_v37 }
 0x90b   : > { %3128 = vmatprep.subr.bf16.mxu1 %v3385_v4 }
 0x90e   : > { %v3290_v38 = vpop.eup %3289 }
 0x90f   : > { %v1952_v39 = vmul.f32 %v3290_v38, %v3286_v41  ;;  %v3252_v41 = vld [vmem:[%s3583_s6] sm:$0xff]  }
 0x911   : > { %v1954_v42 = vpack.c.bf16 %v1952_v39, %v1952_v39 }
 0x912   : > { %v3292_v21 = vpop.eup %3291 }
 0x913   : > { %3119 = vmatmul.mubr.msk.bf16.vlgmr.msra.gmra.mxu1 %vm1182_vm3, %v1954_v42  ;;  %v1953_v28 = vmul.f32 %v3292_v21, %v3288_v11  ;;  %v3254_v11 = vld [vmem:[%s3593_s4 + $0x30] sm:$0xff]  }
 0x914   : > { %3132 = vmatprep.mubr.msk.bf16.mxu1 %vm3386_vm1, %v3385_v4  ;;  %3129 = vmatpush3.bf16.msra.mxu1 %v3249_v43  ;;  %v2898_v43 = vld [vmem:[%s4021_s3] ss:$0 sm:$0xff] }
 0x915   : > { %v1955_v40 = vpack.c.bf16 %v1953_v28, %v1953_v28  ;;  %3130 = vmatprep.subr.bf16.mxu1 %v3385_v4 }
 0x917   : > { %3125 = vmatmul.mubr.msk.bf16.vlgmr.msra.gmra.mxu0 %vm1182_vm3, %v1955_v40 }
 0x918   : > { %3140 = vmatprep.mubr.msk.bf16.mxu0 %vm3386_vm1, %v3385_v4  ;;  %3131 = vmatpush3.bf16.msra.mxu1 %v3250_v32 }
 0x919   : > { %3144 = vmatprep.subr.bf16.mxu1 %v3385_v4  ;;  %3137 = vmatpush3.bf16.msra.mxu0 %v3251_v33 }
 0x91a   : > { %3138 = vmatprep.subr.bf16.mxu0 %v3385_v4 }
 0x91d   : > { %3139 = vmatpush3.bf16.msra.mxu0 %v3252_v41  ;;  %v2913_v41 = vld [vmem:[%s949_s18] ss:$0 sm:$0xff] }
 0x9d3   : > { %v1998_v44 = vpop.f32.mrf.mxu1 }
 0x9d5   : > { %v3120_v45 = vpop.f32.mrf.mxu1 }
 0x9d7   : > { %v2001_v46 = vpop.f32.mrf.mxu1  ;;  %v2046_v47 = vpop.f32.mrf.mxu0 }
 0x9d8   : > { %v3238_v48 = vpack.i.bf16 %v2046_v47, %v1998_v44  ;;  %v2899_v46 = vld [vmem:[%s4022_s21] ss:$0 sm:$0xff] }
 0x9d9   : > { %v3121_v49 = vpop.f32.mrf.mxu1  ;;  %v3126_v50 = vpop.f32.mrf.mxu0 }
 0x9da   : > { %3239 = vrot.lane.b32.xlu0 %v3238_v48, %s3392_s27  ;;  %s4025_s27 = sld [smem:[#allocation9_spill]] }
 0x9db   : > { %v2049_v51 = vpop.f32.mrf.mxu0 }
 0x9dc   : > { %v3258_v51 = vld [vmem:[%s3593_s4 + $0x10] sm:$0xff]  }
 0x9dd   : > { %v3127_v52 = vpop.f32.mrf.mxu0 }
 0x9de   : > { %v3259_v52 = vld [vmem:[%s3593_s4 + $0x8] sm:$0xff]  }
 0x9e0   : > { %p2915_p6 = scmp.ne.s32.totalorder %s4025_s27, 1 }
 0x9e1   : > { %s4026_s25 = sld [smem:[#allocation22_spill]] (!%p2915_p6) }
 0x9e2   : > { %s4027_s29 = sld [smem:[#allocation24_spill]] (!%p2915_p6) }
 0x9e3   : > { %s4029_s19 = sld [smem:[#allocation23_spill]] (!%p2915_p6) }
 0x9e4   : > { %s4030_s24 = sld [smem:[#allocation25_spill]] (!%p2915_p6) }
 0x9e8   : > { %s4028_s6 = smov (!%p2915_p6), %s4027_s29 }
 0xa4c   : > { %v3240_v58 = vpop.permute.xlu0 %3239 }
 0xa4d   : > { %v3242_v61 = vunpack.i.h.bf16 %v3240_v58  ;;  %v3241_v62 = vunpack.i.l.bf16 %v3240_v58 }
 0xa4f   : > { %v2083_v1 = vsel %vm2081_vm6, %v2080_v0, %v3242_v61  ;;  %v2082_v2 = vsel %vm2081_vm6, %v2079_v63, %v3241_v62 }
 0xa50   : > { %v2084_v3 = vpack.c.bf16 %v2083_v1, %v2082_v2 }
 0xa52   : > { %3133 = vmatmul.mubr.msk.bf16.vlgmr.msra.gmra.mxu1 %vm991_vm2, %v2084_v3 }
 0xa53   : > { %3160 = vmatprep.mubr.msk.bf16.mxu1 %vm3386_vm1, %v3385_v4  ;;  %3145 = vmatpush3.bf16.msra.mxu1 %v3253_v8 }
 0xa54   : > { %3146 = vmatprep.subr.bf16.mxu1 %v3385_v4 }
 0xa57   : > { %3147 = vmatpush3.bf16.msra.mxu1 %v3254_v11  ;;  %v2914_v11 = vld [vmem:[%s952_s7] ss:$0 sm:$0xff] }
 0xa58   : > { %3148 = vmatprep.subr.bf16.mxu1 %v3385_v4 }
 0xa5b   : > { %3149 = vmatpush3.bf16.msra.mxu1 %v3255_v12 }
 0xa5c   : > { %3150 = vmatprep.subr.bf16.mxu1 %v3385_v4 }
 0xa5f   : > { %3151 = vmatpush3.bf16.msra.mxu1 %v3256_v34 }
 0xa60   : > { %3152 = vmatprep.subr.bf16.mxu1 %v3385_v4 }
 0xa63   : > { %3153 = vmatpush3.bf16.msra.mxu1 %v3257_v35 }
 0xa64   : > { %3154 = vmatprep.subr.bf16.mxu1 %v3385_v4 }
 0xa67   : > { %3155 = vmatpush3.bf16.msra.mxu1 %v3258_v51 }
 0xa68   : > { %3156 = vmatprep.subr.bf16.mxu1 %v3385_v4 }
 0xa6b   : > { %3157 = vmatpush3.bf16.msra.mxu1 %v3259_v52 }
 0xa6c   : > { %3158 = vmatprep.subr.bf16.mxu1 %v3385_v4  ;;  %v2904_v4 = vld [vmem:[%s946_s17] ss:$0 sm:$0xff] }
 0xa6f   : > { %3159 = vmatpush3.bf16.msra.mxu1 %v3260_v53 }
 0xb12   : > { %v2145_v5 = vpop.f32.mrf.mxu1 }
 0xb13   : > { %v2146_v9 = vadd.f32 %v2894_v20, %v2145_v5 }
 0xb14   : > { %v3134_v17 = vpop.f32.mrf.mxu1 }
 0xb15   : > { %v2152_v10 = vadd.f32 %v2146_v9, %v3615_v6 }
 0xb16   : > { %v2148_v13 = vpop.f32.mrf.mxu1 }
 0xb17   : > { %v2149_v14 = vadd.f32 %v2894_v20, %v2148_v13  ;;  %v2156_v15 = vsel %vm991_vm2, %v2152_v10, 0.0 }
 0xb18   : > { %2157 = vadd.xlane.f32.xlu1 %v2156_v15  ;;  %v3135_v16 = vpop.f32.mrf.mxu1 }
 0xb19   : > { %v2153_v18 = vadd.f32 %v2149_v14, %v3617_v7 }
 0xb1b   : > { %v2159_v19 = vsel %vm991_vm2, %v2153_v18, 0.0 }
 0xb1c   : > { %2160 = vadd.xlane.f32.xlu0 %v2159_v19 }
 0xba1   : > { %v2158_v22 = vpop.xlane.xlu1 %2157 }
 0xba2   : > { %v2163_v23 = vmul.f32 0.03125, %v2158_v22 }
 0xba4   : > { %v2165_v24 = vsub.f32 %v2152_v10, %v2163_v23 }
 0xba5   : > { %v2161_v25 = vpop.xlane.xlu0 %2160 }
 0xba6   : > { %v2164_v6 = vmul.f32 0.03125, %v2161_v25  ;;  %v2167_v26 = vmul.f32 %v2165_v24, %v2165_v24 }
 0xba8   : > { %v2166_v27 = vsub.f32 %v2153_v18, %v2164_v6  ;;  %v2169_v29 = vsel %vm991_vm2, %v2167_v26, 0.0 }
 0xba9   : > { %2170 = vadd.xlane.f32.xlu0 %v2169_v29 }
 0xbaa   : > { %v2168_v31 = vmul.f32 %v2166_v27, %v2166_v27 }
 0xbac   : > { %v2172_v7 = vsel %vm991_vm2, %v2168_v31, 0.0 }
 0xbad   : > { %2173 = vadd.xlane.f32.xlu0 %v2172_v7 }
 0xc32   : > { %v2171_v36 = vpop.xlane.xlu0 %2170 }
 0xc33   : > { %v2175_v37 = vmul.f32 0.03125, %v2171_v36 }
 0xc35   : > { %v2177_v38 = vadd.f32 1e-05, %v2175_v37 }
 0xc36   : > { %v2174_v39 = vpop.xlane.xlu0 %2173 }
 0xc37   : > { %3293 = vrsqrt.f32 %v2177_v38  ;;  %v2176_v42 = vmul.f32 0.03125, %v2174_v39 }
 0xc39   : > { %v2178_v21 = vadd.f32 1e-05, %v2176_v42 }
 0xc3b   : > { %3295 = vrsqrt.f32 %v2178_v21 }
 0xc44   : > { %v3294_v28 = vpop.eup %3293 }
 0xc45   : > { %v2181_v40 = vmul.f32 %v3294_v28, %v2165_v24 }
 0xc47   : > { %v2189_v45 = vmul.f32 %v2898_v43, %v2181_v40 }
 0xc48   : > { %v3296_v32 = vpop.eup %3295 }
 0xc49   : > { %v2182_v44 = vmul.f32 %v3296_v32, %v2166_v27  ;;  %v2197_v48 = vadd.f32 %v2899_v46, %v2189_v45 }
 0xc4b   : > { %v2190_v47 = vmul.f32 %v2898_v43, %v2182_v44 }
 0xc4d   : > { %v2198_v49 = vadd.f32 %v2899_v46, %v2190_v47 }
 0xc4f   : > { %v2199_v50 = vpack.c.bf16 %v2198_v49, %v2197_v48 }
 0xc51   : > { %3141 = vmatmul.mubr.msk.bf16.vlgmr.msra.gmra.mxu0 %vm991_vm2, %v2199_v50 }
 0xd11   : > { %v2276_v54 = vpop.f32.mrf.mxu0 }
 0xd12   : > { %v2277_v56 = vadd.f32 %v2900_v30, %v2276_v54 }
 0xd13   : > { %v3142_v55 = vpop.f32.mrf.mxu0 }
 0xd14   : > { %v2283_v60 = vmax.f32 %v2277_v56, 0.0 }
 0xd15   : > { %v2279_v57 = vpop.f32.mrf.mxu0 }
 0xd16   : > { %v2280_v58 = vadd.f32 %v2900_v30, %v2279_v57 }
 0xd17   : > { %v3143_v59 = vpop.f32.mrf.mxu0 }
 0xd18   : > { %v2284_v61 = vmax.f32 %v2280_v58, 0.0 }
 0xd1a   : > { %v2285_v62 = vpack.c.bf16 %v2284_v61, %v2283_v60 }
 0xd1c   : > { %3161 = vmatmul.mubr.bf16.vlgmr.msra.gmra.mxu1 %v2285_v62 }
 0xddc   : > { %v2375_v63 = vpop.f32.mrf.mxu1 }
 0xddd   : > { %v2376_v0 = vadd.f32 %v2904_v4, %v2375_v63 }
 0xdde   : > { %v3162_v1 = vpop.f32.mrf.mxu1 }
 0xddf   : > { %v2382_v2 = vadd.f32 %v2376_v0, %v2197_v48 }
 0xde0   : > { %v2378_v3 = vpop.f32.mrf.mxu1 }
 0xde1   : > { %v2379_v20 = vadd.f32 %v2904_v4, %v2378_v3  ;;  %v2386_v5 = vsel %vm991_vm2, %v2382_v2, 0.0 }
 0xde2   : > { %2387 = vadd.xlane.f32.xlu1 %v2386_v5  ;;  %v3163_v9 = vpop.f32.mrf.mxu1 }
 0xde3   : > { %v2383_v17 = vadd.f32 %v2379_v20, %v2198_v49 }
 0xde5   : > { %v2389_v10 = vsel %vm991_vm2, %v2383_v17, 0.0 }
 0xde6   : > { %2390 = vadd.xlane.f32.xlu0 %v2389_v10 }
 0xe6b   : > { %v2388_v13 = vpop.xlane.xlu1 %2387 }
 0xe6c   : > { %v2392_v14 = vmul.f32 0.03125, %v2388_v13 }
 0xe6e   : > { %v2394_v15 = vsub.f32 %v2382_v2, %v2392_v14 }
 0xe6f   : > { %v2391_v16 = vpop.xlane.xlu0 %2390 }
 0xe70   : > { %v2393_v18 = vmul.f32 0.03125, %v2391_v16  ;;  %v2396_v19 = vmul.f32 %v2394_v15, %v2394_v15 }
 0xe72   : > { %v2395_v22 = vsub.f32 %v2383_v17, %v2393_v18  ;;  %v2398_v23 = vsel %vm991_vm2, %v2396_v19, 0.0 }
 0xe73   : > { %2399 = vadd.xlane.f32.xlu1 %v2398_v23 }
 0xe74   : > { %v2397_v24 = vmul.f32 %v2395_v22, %v2395_v22 }
 0xe76   : > { %v2401_v25 = vsel %vm991_vm2, %v2397_v24, 0.0 }
 0xe77   : > { %2402 = vadd.xlane.f32.xlu0 %v2401_v25 }
 0xefc   : > { %v2400_v6 = vpop.xlane.xlu1 %2399 }
 0xefd   : > { %v2404_v26 = vmul.f32 0.03125, %v2400_v6 }
 0xeff   : > { %v2406_v27 = vadd.f32 1e-05, %v2404_v26 }
 0xf00   : > { %v2403_v29 = vpop.xlane.xlu0 %2402 }
 0xf01   : > { %3297 = vrsqrt.f32 %v2406_v27  ;;  %v2405_v31 = vmul.f32 0.03125, %v2403_v29 }
 0xf03   : > { %v2407_v7 = vadd.f32 1e-05, %v2405_v31 }
 0xf05   : > { %3299 = vrsqrt.f32 %v2407_v7 }
 0xf0e   : > { %v3298_v33 = vpop.eup %3297 }
 0xf0f   : > { %v2410_v8 = vmul.f32 %v3298_v33, %v2394_v15 }
 0xf11   : > { %v2418_v12 = vmul.f32 %v2913_v41, %v2410_v8 }
 0xf12   : > { %v3300_v34 = vpop.eup %3299 }
 0xf13   : > { %v2426_v35 = vadd.f32 %v2914_v11, %v2418_v12  ;;  %v2411_v36 = vmul.f32 %v3300_v34, %v2395_v22 }
 0xf15   : > { %2428 = vst.msk [vmem:[#allocation2] sm:$0xff] %vm991_vm2, %v2426_v35  ;;  %v2419_v37 = vmul.f32 %v2913_v41, %v2411_v36  ;;  %2433 = sbr.rel (%p2915_p6) target bundleno = 4087 (0xff7), region = 112 }
 0xf17   : > { %v2427_v38 = vadd.f32 %v2914_v11, %v2419_v37 }
 0xf19   : > { %2429 = vst.msk [vmem:[#allocation2 + $0x8] sm:$0xff] %vm991_vm2, %v2427_v38 }
 0xf1a   : > { %v3301_v39 = vld [vmem:[%s4026_s25 + $0x8] sm:$0xff]   ;;  %v3393_v42 = vmov 0.0   ;;  %v3303_v28 = vld [vmem:[%s4026_s25] sm:$0xff]   ;;  %vm3394_vm7 = vmmov 0   ;;  %v2434_v40 = vsel %vm991_vm2, %v2426_v35, 0.0  ;;  %v2441_v44 = vsel %vm991_vm2, %v2427_v38, 0.0 }
 0xf1b   : > { %3164 = vmatprep.subr.bf16.mxu0 %v3393_v42  ;;  %3172 = vmatprep.subr.bf16.mxu1 %v3393_v42  ;;  %v3302_v21 = vld [vmem:[%s4027_s29 + $0x8] sm:$0xff]   ;;  %v3304_v43 = vld [vmem:[%s4028_s6] sm:$0xff]   ;;  %v2435_v32 = vrot.slane %v2434_v40, 4  ;;  %v2442_v46 = vrot.slane %v2441_v44, 4  ;;  %vm2468_vm8 = vcmask 1041409   ;;  %vm2526_vm9 = vcmask 123904  }
 0xf1c   : > { %3165 = vmatpush3.bf16.msra.mxu0 %v3301_v39  ;;  %3168 = vmatprep.mubr.msk.bf16.mxu0 %vm3394_vm7, %v3393_v42  ;;  %v2916_v4 = vld [vmem:[%s4029_s19] ss:$0 sm:$0xff] }
 0xf1d   : > { %3173 = vmatpush3.bf16.msra.mxu1 %v3302_v21  ;;  %3166 = vmatprep.subr.bf16.mxu0 %v3393_v42  ;;  %v2436_v45 = vadd.f32 %v2435_v32, %v2434_v40  ;;  %v2443_v48 = vadd.f32 %v2442_v46, %v2441_v44  ;;  %v2920_v63 = vld [vmem:[%s4030_s24] ss:$0 sm:$0xff] }
 0xf1e   : > { %3174 = vmatprep.subr.bf16.mxu1 %v3393_v42  ;;  %3176 = vmatprep.mubr.msk.bf16.mxu1 %vm3394_vm7, %v3393_v42 }
 0xf1f   : > { %v2437_v47 = vrot.slane %v2436_v45, 2  ;;  %v2444_v50 = vrot.slane %v2443_v48, 2 }
 0xf20   : > { %3167 = vmatpush3.bf16.msra.mxu0 %v3303_v28 }
 0xf21   : > { %3175 = vmatpush3.bf16.msra.mxu1 %v3304_v43  ;;  %v2438_v49 = vadd.f32 %v2437_v47, %v2436_v45  ;;  %v2445_v52 = vadd.f32 %v2444_v50, %v2443_v48 }
 0xf23   : > { %v2439_v51 = vrot.slane %v2438_v49, 1  ;;  %v2446_v30 = vrot.slane %v2445_v52, 1 }
 0xf25   : > { %v2440_v53 = vadd.f32 %v2439_v51, %v2438_v49  ;;  %v2447_v54 = vadd.f32 %v2446_v30, %v2445_v52 }
 0xf27   : > { %v2449_v55 = vmul.f32 0.125, %v2440_v53  ;;  %v2450_v56 = vmul.f32 0.125, %v2447_v54 }
 0xf29   : > { %v2451_v57 = vpack.c.bf16 %v2449_v55, %v2449_v55  ;;  %v2452_v58 = vpack.c.bf16 %v2450_v56, %v2450_v56 }
 0xf2b   : > { %v2466_v59 = vunpack.c.l.b16 %v2451_v57  ;;  %v2467_v60 = vunpack.c.l.b16 %v2452_v58 }
 0xf2d   : > { %v2469_v61 = vsel %vm2468_vm8, %v2467_v60, %v2466_v59 }
 0xf2e   : > { %v2470_v62 = vpack.c.b16 %v2469_v61, %v2469_v61 }
 0xf30   : > { %3169 = vmatmul.mubr.msk.bf16.vlgmr.msra.gmra.mxu0 %vm991_vm2, %v2470_v62  ;;  %3177 = vmatmul.mubr.msk.bf16.vlgmr.msra.gmra.mxu1 %vm991_vm2, %v2470_v62 }
 0xff0   : > { %v2520_v0 = vpop.f32.mrf.mxu0  ;;  %v2585_v1 = vpop.f32.mrf.mxu1 }
 0xff1   : > { %v2521_v2 = vadd.f32 %v2916_v4, %v2520_v0  ;;  %v2586_v3 = vadd.f32 %v2920_v63, %v2585_v1 }
 0xff2   : > { %v3170_v20 = vpop.f32.mrf.mxu0  ;;  %v3178_v5 = vpop.f32.mrf.mxu1 }
 0xff3   : > { %2527 = vst.msk [vmem:[#allocation3] sm:$0x3] %vm2526_vm9, %v2521_v2  ;;  %2591 = vst.msk [vmem:[#allocation5] sm:$0x3] %vm2526_vm9, %v2586_v3 }
 0xff4   : > { %v2523_v9 = vpop.f32.mrf.mxu0  ;;  %v2588_v17 = vpop.f32.mrf.mxu1 }
 0xff6   : > { %v3171_v10 = vpop.f32.mrf.mxu0  ;;  %v3179_v13 = vpop.f32.mrf.mxu1 }
 0xff7 PF: > { %s4031_s4 = sld [smem:[#allocation11_spill]]  ;;  %s3395_s28 = smov [#allocation3]  }
 0xff8   : > { %s2601_s22 = sshll.u32 %s3395_s28, 4  ;;  %s3396_s27 = smov [#allocation5]   ;;  %s2602_s22 = int_to_ptr.vmem [resolvable:$true] %s2601_s22 }
 0xff9   : > { %s2614_s18 = sshll.u32 %s3396_s27, 4  ;;  %s3305_s16 = scalar_lea.vmem %s2602_s22, 32  ;;  %s2615_s18 = int_to_ptr.vmem [resolvable:$true] %s2614_s18 }
 0xffa   : > { %p3306_p8 = scmp.ne.s32.totalorder %s2602_s22, %s3305_s16  ;;  %p3312_p11 = scmp.lt.s32.totalorder %s2602_s22, %s2602_s22 }
 0xffb   : > { %p3313_p12 = scmp.lt.s32.totalorder %s3305_s16, %s3305_s16 }
 0xffd   : > { %s4032_s17 = sadd.s32 4294967295, %s4031_s4   ;;  %p3314_p13 = por %p3313_p12, %p3312_p11 }
 0xffe   : > { %p3922_p7 = scmp.eq.s32.totalorder %s4032_s17, 1 }
0x1000   : > { %p3307_p9 = pnand %p3306_p8, %p3922_p7 }
0x1002   : > { %p3308_p10 = pneg %p3307_p9 }
0x1004   : > { %p3315_p0 = pnand %p3314_p13, %p3308_p10 }
0x1006   : > { %3318 = shalt.err (!%p3315_p0)
}
0x1007   : > { %s4034_s29 = sld [smem:[#allocation26_spill]]  ;;  %s3329_s1 = scalar_lea.vmem %s2615_s18, 32 }
0x1008   : > { %p3330_p1 = scmp.ne.s32.totalorder %s2615_s18, %s3329_s1  ;;  %p3336_p4 = scmp.lt.s32.totalorder %s2615_s18, %s2615_s18 }
0x1009   : > { %p3337_p5 = scmp.lt.s32.totalorder %s3329_s1, %s3329_s1 }
0x100a   : > { %p3331_p2 = pnand %p3330_p1, %p3922_p7 }
0x100b   : > { %p3338_p6 = por %p3337_p5, %p3336_p4 }
0x100c   : > { %p3332_p3 = pneg %p3331_p2 }
0x100d   : > { %3181 = dma.vmem_to_hbm [thread:$0]  (%p3922_p7), %s2602_s22, 32, %s4034_s29, [#allocation4]  }
0x100e   : > { %p3339_p8 = pnand %p3338_p6, %p3332_p3 }
0x1010   : > { %3342 = shalt.err (!%p3339_p8)
}
0x1011   : > { %s4035_s30 = sld [smem:[#allocation27_spill]] }
0x1017   : > { %3183 = dma.vmem_to_hbm [thread:$0]  (%p3922_p7), %s2615_s18, 32, %s4035_s30, [#allocation6]  }
0x1018   : > { %3366 = dma.done.wait (%p3922_p7), [#allocation4], 32  }
0x1019   : > { %3368 = vsyncadd (%p3922_p7), [#allocation4], 4294967264 }
0x101a   : > { %3370 = dma.done.wait (%p3922_p7), [#allocation6], 32  }
0x101b   : > { %3372 = vsyncadd (%p3922_p7), [#allocation6], 4294967264 }
0x101c PF: > { %s4036_s21 = sld [smem:[#allocation11_spill]] }
0x101d   : > { %s4037_s3 = sld [smem:[#allocation10_spill]] }
0x101e   : > { %s4038_s28 = sld [smem:[#allocation12_spill]] }
0x1022   : > { %s35_s29 = sadd.s32 1, %s4036_s21  }
0x1023   : > { %p32_p9 = scmp.ge.s32.totalorder %s35_s29, 4  }
0x1025   :  { %34 = sbr.rel (!%p32_p9) target bundleno = 19 (0x13), region = 197 }
0x102a   :  { %2631 = vsyncpa [#allocation4], 1 }
0x102b   :  { %2633 = vsyncpa [#allocation4 + $0x1], 1 }
0x102c   :  { %2634 = vsyncpa [#allocation6], 1 }

</bundles_post_ra>
